<compile_context>
chip_gen: v6e
topology: v6e:2x2x1
jax: 0.10.0
libtpu: 0.0.40
codegen_flags: <defaults>
</compile_context>

<pallas_src>
import functools
import math

import jax
import jax.numpy as jnp
from jax.experimental import pallas as pl
from jax.experimental.pallas import tpu as pltpu


# ----------------------------------------------------------------------------- linear

def _linear_kernel(x_ref, w_ref, b_ref, o_ref, *, nk):
    """One (tm, tn) output tile; grid = (M-tiles, N-tiles, K-tiles).

    Accumulates directly into o_ref (f32) -- no scratch accumulator -- and applies
    the bias epilogue in place on the last K step.
    """
    kk = pl.program_id(2)

    @pl.when(kk == 0)
    def _():
        o_ref[...] = jnp.zeros_like(o_ref)

    o_ref[...] += jnp.dot(x_ref[...], w_ref[...],
                          preferred_element_type=jnp.float32)

    @pl.when(kk == nk - 1)
    def _():
        o_ref[...] = o_ref[...] + b_ref[...]


def _pick_tile(dim, target, align):
    """Largest align-multiple divisor of dim that is <= target, else the full dim
    (never silently drops a contraction remainder)."""
    if dim <= target:
        return dim
    t = (target // align) * align
    while t >= align:
        if dim % t == 0:
            return t
        t -= align
    return dim


def linear(x, w, b):
    """x: (M, K) @ w: (K, N) + b: (N,) -> (M, N), float32."""
    M, K = x.shape
    Kw, N = w.shape
    assert K == Kw
    tm = _pick_tile(M, 256, 8)
    tn = _pick_tile(N, 512, 128)
    tk = _pick_tile(K, 512, 128)
    nm, nn, nk = M // tm, N // tn, K // tk
    kernel = functools.partial(_linear_kernel, nk=nk)
    return pl.pallas_call(
        kernel,
        out_shape=jax.ShapeDtypeStruct((M, N), jnp.float32),
        grid=(nm, nn, nk),
        in_specs=[
            pl.BlockSpec((tm, tk), lambda i, j, k: (i, k)),
            pl.BlockSpec((tk, tn), lambda i, j, k: (k, j)),
            pl.BlockSpec((1, tn), lambda i, j, k: (0, j)),
        ],
        out_specs=pl.BlockSpec((tm, tn), lambda i, j, k: (i, j)),
        compiler_params=pltpu.CompilerParams(
            dimension_semantics=("parallel", "parallel", "arbitrary"),
            vmem_limit_bytes=48 * 1024 * 1024,
        ),
    )(x, w, b.reshape(1, N))


# -------------------------------------------------------- fused attention + pooling

def _attn_pool_kernel(qkv_ref, x_ref, wo_ref, bo_ref, w1_ref, b1_ref,
                      w2_ref, b2_ref, out_ref, wgt_ref, *, nh, dh, scale):
    """Per-batch: multi-head self-attention (all heads in-kernel), fused out_proj,
    fused fc1 scorer (lane-dense (1, S) logits), pooling softmax, weighted token sum,
    and fc2 -- one pallas_call for everything after the QKV projection."""
    C = nh * dh
    qkv = qkv_ref[0]                       # (S, 3C)
    xb = x_ref[0]                          # (S, C)
    wo = wo_ref[...]                       # (C, C)
    S = qkv.shape[0]

    attn = jnp.zeros((S, C), jnp.float32)
    for h in range(nh):                    # static unroll; heads batched per grid step
        lo, hi = h * dh, (h + 1) * dh
        qh = qkv[:, lo:hi]                 # (S, dh)
        kh = qkv[:, C + lo:C + hi]         # (S, dh)
        vh = qkv[:, 2 * C + lo:2 * C + hi]  # (S, dh)
        # q @ k^T via dot_general contracting dim 1 of both (no explicit transpose).
        s = jax.lax.dot_general(qh, kh, (((1,), (1,)), ((), ())),
                                preferred_element_type=jnp.float32) * scale   # (S, S)
        s = s - jnp.max(s, axis=-1, keepdims=True)
        p = jnp.exp(s)
        p = p * pl.reciprocal(jnp.sum(p, axis=-1, keepdims=True), approx=True)
        ctx_h = jnp.dot(p, vh, preferred_element_type=jnp.float32)            # (S, dh)
        # fused out_proj: concat_h(ctx_h) @ Wo == sum_h ctx_h @ Wo[h*dh:(h+1)*dh, :]
        attn = attn + jnp.dot(ctx_h, wo[lo:hi, :],
                              preferred_element_type=jnp.float32)             # (S, C)
    attn = attn + bo_ref[...]                                                 # (S, C)

    # fc1 scorer, emitted lane-dense as (1, S) instead of a (S, 1) matmul output.
    logits = jax.lax.dot_general(w1_ref[...], attn, (((1,), (1,)), ((), ())),
                                 preferred_element_type=jnp.float32)          # (1, S)
    logits = logits + b1_ref[...]          # shift-invariant under softmax; kept for parity
    logits = logits - jnp.max(logits, axis=-1, keepdims=True)
    e = jnp.exp(logits)
    w = e * pl.reciprocal(jnp.sum(e, axis=-1, keepdims=True), approx=True)    # (1, S)

    pooled = jnp.dot(w, xb, preferred_element_type=jnp.float32)               # (1, C)
    out = jnp.dot(pooled, w2_ref[...],
                  preferred_element_type=jnp.float32) + b2_ref[...]           # (1, OUT)

    out_ref[0] = out
    wgt_ref[0] = w


def attention_pooling_forward(params, x, num_heads=4):
    """Forward of AttentionPoolingLayer.  x: (B, S, C) -> ((B, OUT), (B, S, 1))."""
    B, S, C = x.shape
    dh = C // num_heads
    OUT = params["fc2_w"].shape[1]

    # Fused QKV projection (one tiled linear instead of three).
    qkv = linear(x.reshape(B * S, C), params["in_proj_w"], params["in_proj_b"])
    qkv = qkv.reshape(B, S, 3 * C)

    kernel = functools.partial(_attn_pool_kernel, nh=num_heads, dh=dh,
                               scale=1.0 / math.sqrt(dh))
    out, w = pl.pallas_call(
        kernel,
        out_shape=(jax.ShapeDtypeStruct((B, 1, OUT), jnp.float32),
                   jax.ShapeDtypeStruct((B, 1, S), jnp.float32)),
        grid=(B,),
        in_specs=[
            pl.BlockSpec((1, S, 3 * C), lambda b: (b, 0, 0)),   # qkv
            pl.BlockSpec((1, S, C), lambda b: (b, 0, 0)),       # x (residual for pooling)
            pl.BlockSpec((C, C), lambda b: (0, 0)),             # out_proj W
            pl.BlockSpec((1, C), lambda b: (0, 0)),             # out_proj b
            pl.BlockSpec((1, C), lambda b: (0, 0)),             # fc1 W (row vector)
            pl.BlockSpec((1, 1), lambda b: (0, 0)),             # fc1 b
            pl.BlockSpec((C, OUT), lambda b: (0, 0)),           # fc2 W
            pl.BlockSpec((1, OUT), lambda b: (0, 0)),           # fc2 b
        ],
        out_specs=[
            pl.BlockSpec((1, 1, OUT), lambda b: (b, 0, 0)),
            pl.BlockSpec((1, 1, S), lambda b: (b, 0, 0)),
        ],
        compiler_params=pltpu.CompilerParams(
            dimension_semantics=("parallel",),
            vmem_limit_bytes=48 * 1024 * 1024,
        ),
    )(qkv, x,
      params["out_proj_w"], params["out_proj_b"].reshape(1, C),
      params["fc1_w"], params["fc1_b"].reshape(1, 1),
      params["fc2_w"], params["fc2_b"].reshape(1, OUT))

    output = out.reshape(B, OUT)
    weights = w.reshape(B, S, 1)      # matches torch's (B, S, 1)
    return output, weights


# ---------------------------------------------------------------------- params & ref

def init_params(key, C, OUT):
    """Weights stored as (in_features, out_features), i.e. transposed from torch."""
    ks = jax.random.split(key, 8)
    std = 0.05

    def nrm(k, shape):
        return (jax.random.normal(k, shape, jnp.float32) * std).astype(jnp.float32)

    return dict(
        in_proj_w=nrm(ks[0], (C, 3 * C)),   # MultiheadAttention in_proj (transposed)
        in_proj_b=nrm(ks[1], (3 * C,)),
        out_proj_w=nrm(ks[2], (C, C)),
        out_proj_b=nrm(ks[3], (C,)),
        fc1_w=nrm(ks[4], (1, C)),           # torch fc1.weight shape (1, C)
        fc1_b=nrm(ks[5], (1,)),
        fc2_w=nrm(ks[6], (C, OUT)),
        fc2_b=nrm(ks[7], (OUT,)),
    )


def reference_forward(params, x, num_heads=4):
    """Pure-JAX reference matching the PyTorch forward (eval mode)."""
    B, S, C = x.shape
    dh = C // num_heads
    qkv = x @ params["in_proj_w"] + params["in_proj_b"]
    q, k, v = jnp.split(qkv, 3, axis=-1)

    def heads(t):
        return t.reshape(B, S, num_heads, dh).transpose(0, 2, 1, 3)

    qh, kh, vh = heads(q), heads(k), heads(v)
    s = jnp.einsum("bhqd,bhkd->bhqk", qh, kh) / math.sqrt(dh)
    p = jax.nn.softmax(s, axis=-1)
    ctx = jnp.einsum("bhqk,bhkd->bhqd", p, vh)
    ctx = ctx.transpose(0, 2, 1, 3).reshape(B, S, C)
    attn = ctx @ params["out_proj_w"] + params["out_proj_b"]
    logits = jnp.einsum("bsc,c->bs", attn, params["fc1_w"][0]) + params["fc1_b"][0]
    w = jax.nn.softmax(logits, axis=-1)
    pooled = jnp.einsum("bs,bsc->bc", w, x)
    out = pooled @ params["fc2_w"] + params["fc2_b"]
    return out, w[..., None]


# ------------------------------------------------------------------------------- main

if __name__ == "__main__":
    B, S = 2, 16
    IN_CHANNELS, OUT_CHANNELS, NUM_HEADS = 128, 128, 4   # head_dim = 32

    key = jax.random.PRNGKey(0)
    k_param, k_x = jax.random.split(key)
    params = init_params(k_param, IN_CHANNELS, OUT_CHANNELS)
    x = jax.random.normal(k_x, (B, S, IN_CHANNELS), jnp.float32)

    fwd = jax.jit(functools.partial(attention_pooling_forward, num_heads=NUM_HEADS))
    output, weights = fwd(params, x)
    jax.block_until_ready((output, weights))

    assert output.shape == (B, OUT_CHANNELS), output.shape
    assert weights.shape == (B, S, 1), weights.shape
    assert jnp.all(jnp.isfinite(output)) and jnp.all(jnp.isfinite(weights))

    ref_out, ref_w = reference_forward(params, x, NUM_HEADS)
    assert jnp.allclose(output, ref_out, atol=3e-3, rtol=3e-2), \
        float(jnp.max(jnp.abs(output - ref_out)))
    assert jnp.allclose(weights, ref_w, atol=3e-3, rtol=3e-2), \
        float(jnp.max(jnp.abs(weights - ref_w)))

    print("KERNEL_OK")
</pallas_src>

<mosaic_0001>
module attributes {stable_mosaic.version = 11 : i64} {
  func.func @_linear_kernel(%arg0: i32, %arg1: i32, %arg2: i32, %arg3: memref<32x128xf32, #tpu.memory_space<vmem>>, %arg4: memref<128x384xf32, #tpu.memory_space<vmem>>, %arg5: memref<1x384xf32, #tpu.memory_space<vmem>>, %arg6: memref<32x384xf32, #tpu.memory_space<vmem>>) attributes {dimension_semantics = [#tpu.dimension_semantics<parallel>, #tpu.dimension_semantics<parallel>, #tpu.dimension_semantics<arbitrary>], iteration_bounds = array<i64: 1, 1, 1>, scalar_prefetch = 0 : i64, scratch_operands = 0 : i64, tpu.core_type = #tpu.core_type<tc>, window_params = [{transform_indices = @transform_0, window_bounds = array<i64: 32, 128>}, {transform_indices = @transform_1, window_bounds = array<i64: 128, 384>}, {transform_indices = @transform_2, window_bounds = array<i64: 1, 384>}, {transform_indices = @transform_3, window_bounds = array<i64: 32, 384>}]} {
    %c0_i32 = arith.constant 0 : i32
    %0 = arith.cmpi eq, %arg2, %c0_i32 : i32
    %1 = arith.extui %0 : i1 to i32
    %c0_i32_0 = arith.constant 0 : i32
    %2 = arith.cmpi ne, %1, %c0_i32_0 : i32
    scf.if %2 {
      %cst_10 = arith.constant 0.000000e+00 : f32
      %12 = vector.broadcast %cst_10 : f32 to vector<32x384xf32>
      %c0_11 = arith.constant 0 : index
      %c0_12 = arith.constant 0 : index
      %13 = vector.load %arg6[%c0_11, %c0_12] : memref<32x384xf32, #tpu.memory_space<vmem>>, vector<32x384xf32>
      tpu.vector_store %arg6[%c0_11, %c0_12], %12 {strides = array<i32>} : memref<32x384xf32, #tpu.memory_space<vmem>>, vector<32x384xf32>,
    } else {
    }
    %c0 = arith.constant 0 : index
    %c0_1 = arith.constant 0 : index
    %3 = vector.load %arg6[%c0, %c0_1] : memref<32x384xf32, #tpu.memory_space<vmem>>, vector<32x384xf32>
    %c0_2 = arith.constant 0 : index
    %c0_3 = arith.constant 0 : index
    %4 = vector.load %arg3[%c0_2, %c0_3] : memref<32x128xf32, #tpu.memory_space<vmem>>, vector<32x128xf32>
    %c0_4 = arith.constant 0 : index
    %c0_5 = arith.constant 0 : index
    %5 = vector.load %arg4[%c0_4, %c0_5] : memref<128x384xf32, #tpu.memory_space<vmem>>, vector<128x384xf32>
    %cst = arith.constant dense<0.000000e+00> : vector<32x384xf32>
    %6 = tpu.matmul %4, %5, %cst {dimension_numbers = #tpu.dot_dimension_numbers<[1], [0], [0], [1], [0, 0, 1, 1], [], []>} : vector<32x128xf32>, vector<128x384xf32>, vector<32x384xf32> -> vector<32x384xf32>
    %7 = arith.addf %3, %6 : vector<32x384xf32>
    %c0_6 = arith.constant 0 : index
    %c0_7 = arith.constant 0 : index
    %8 = vector.load %arg6[%c0_6, %c0_7] : memref<32x384xf32, #tpu.memory_space<vmem>>, vector<32x384xf32>
    tpu.vector_store %arg6[%c0_6, %c0_7], %7 {strides = array<i32>} : memref<32x384xf32, #tpu.memory_space<vmem>>, vector<32x384xf32>,
    %c0_i32_8 = arith.constant 0 : i32
    %9 = arith.cmpi eq, %arg2, %c0_i32_8 : i32
    %10 = arith.extui %9 : i1 to i32
    %c0_i32_9 = arith.constant 0 : i32
    %11 = arith.cmpi ne, %10, %c0_i32_9 : i32
    scf.if %11 {
      %c0_10 = arith.constant 0 : index
      %c0_11 = arith.constant 0 : index
      %12 = vector.load %arg6[%c0_10, %c0_11] : memref<32x384xf32, #tpu.memory_space<vmem>>, vector<32x384xf32>
      %c0_12 = arith.constant 0 : index
      %c0_13 = arith.constant 0 : index
      %13 = vector.load %arg5[%c0_12, %c0_13] : memref<1x384xf32, #tpu.memory_space<vmem>>, vector<1x384xf32>
      %14 = vector.broadcast %13 : vector<1x384xf32> to vector<32x384xf32>
      %15 = arith.addf %12, %14 : vector<32x384xf32>
      %c0_14 = arith.constant 0 : index
      %c0_15 = arith.constant 0 : index
      %16 = vector.load %arg6[%c0_14, %c0_15] : memref<32x384xf32, #tpu.memory_space<vmem>>, vector<32x384xf32>
      tpu.vector_store %arg6[%c0_14, %c0_15], %15 {strides = array<i32>} : memref<32x384xf32, #tpu.memory_space<vmem>>, vector<32x384xf32>,
    } else {
    }
    return
  }
  func.func @transform_0(%arg0: i32, %arg1: i32, %arg2: i32) -> (i32, i32) {
    %c0_i32 = arith.constant 0 : i32
    return %arg0, %arg2 : i32, i32
  }
  func.func @transform_1(%arg0: i32, %arg1: i32, %arg2: i32) -> (i32, i32) {
    %c0_i32 = arith.constant 0 : i32
    return %arg2, %arg1 : i32, i32
  }
  func.func @transform_2(%arg0: i32, %arg1: i32, %arg2: i32) -> (i32, i32) {
    %c0_i32 = arith.constant 0 : i32
    %c0_i32_0 = arith.constant 0 : i32
    return %c0_i32, %arg1 : i32, i32
  }
  func.func @transform_3(%arg0: i32, %arg1: i32, %arg2: i32) -> (i32, i32) {
    %c0_i32 = arith.constant 0 : i32
    return %arg0, %arg1 : i32, i32
  }
}

module attributes {stable_mosaic.version = 11 : i64} {
  func.func @_attn_pool_kernel(%arg0: i32, %arg1: memref<1x16x384xf32, #tpu.memory_space<vmem>>, %arg2: memref<1x16x128xf32, #tpu.memory_space<vmem>>, %arg3: memref<128x128xf32, #tpu.memory_space<vmem>>, %arg4: memref<1x128xf32, #tpu.memory_space<vmem>>, %arg5: memref<1x128xf32, #tpu.memory_space<vmem>>, %arg6: memref<1x1xf32, #tpu.memory_space<vmem>>, %arg7: memref<128x128xf32, #tpu.memory_space<vmem>>, %arg8: memref<1x128xf32, #tpu.memory_space<vmem>>, %arg9: memref<1x1x128xf32, #tpu.memory_space<vmem>>, %arg10: memref<1x1x16xf32, #tpu.memory_space<vmem>>) attributes {dimension_semantics = [#tpu.dimension_semantics<parallel>], iteration_bounds = array<i64: 2>, scalar_prefetch = 0 : i64, scratch_operands = 0 : i64, tpu.core_type = #tpu.core_type<tc>, window_params = [{transform_indices = @transform_0, window_bounds = array<i64: 1, 16, 384>}, {transform_indices = @transform_1, window_bounds = array<i64: 1, 16, 128>}, {pipeline_mode = #tpu.pipeline_mode<synchronous>, transform_indices = @transform_2, window_bounds = array<i64: 128, 128>}, {pipeline_mode = #tpu.pipeline_mode<synchronous>, transform_indices = @transform_3, window_bounds = array<i64: 1, 128>}, {pipeline_mode = #tpu.pipeline_mode<synchronous>, transform_indices = @transform_4, window_bounds = array<i64: 1, 128>}, {pipeline_mode = #tpu.pipeline_mode<synchronous>, transform_indices = @transform_5, window_bounds = array<i64: 1, 1>}, {pipeline_mode = #tpu.pipeline_mode<synchronous>, transform_indices = @transform_6, window_bounds = array<i64: 128, 128>}, {pipeline_mode = #tpu.pipeline_mode<synchronous>, transform_indices = @transform_7, window_bounds = array<i64: 1, 128>}, {transform_indices = @transform_8, window_bounds = array<i64: 1, 1, 128>}, {transform_indices = @transform_9, window_bounds = array<i64: 1, 1, 16>}]} {
    %c0 = arith.constant 0 : index
    %c0_0 = arith.constant 0 : index
    %c0_1 = arith.constant 0 : index
    %0 = vector.load %arg1[%c0, %c0_0, %c0_1] : memref<1x16x384xf32, #tpu.memory_space<vmem>>, vector<1x16x384xf32>
    %1 = vector.shape_cast %0 : vector<1x16x384xf32> to vector<16x384xf32>
    %c0_2 = arith.constant 0 : index
    %c0_3 = arith.constant 0 : index
    %c0_4 = arith.constant 0 : index
    %2 = vector.load %arg2[%c0_2, %c0_3, %c0_4] : memref<1x16x128xf32, #tpu.memory_space<vmem>>, vector<1x16x128xf32>
    %3 = vector.shape_cast %2 : vector<1x16x128xf32> to vector<16x128xf32>
    %c0_5 = arith.constant 0 : index
    %c0_6 = arith.constant 0 : index
    %4 = vector.load %arg3[%c0_5, %c0_6] : memref<128x128xf32, #tpu.memory_space<vmem>>, vector<128x128xf32>
    %cst = arith.constant 0.000000e+00 : f32
    %5 = vector.broadcast %cst : f32 to vector<16x128xf32>
    %6 = vector.extract_strided_slice %1 {offsets = [0, 0], sizes = [16, 32], strides = [1, 1]} : vector<16x384xf32> to vector<16x32xf32>
    %7 = vector.extract_strided_slice %1 {offsets = [0, 128], sizes = [16, 32], strides = [1, 1]} : vector<16x384xf32> to vector<16x32xf32>
    %8 = vector.extract_strided_slice %1 {offsets = [0, 256], sizes = [16, 32], strides = [1, 1]} : vector<16x384xf32> to vector<16x32xf32>
    %cst_7 = arith.constant dense<0.000000e+00> : vector<16x16xf32>
    %9 = tpu.matmul %6, %7, %cst_7 {dimension_numbers = #tpu.dot_dimension_numbers<[1], [1], [0], [0], [0, 0, 1, 0], [], []>} : vector<16x32xf32>, vector<16x32xf32>, vector<16x16xf32> -> vector<16x16xf32>
    %cst_8 = arith.constant 0.176776692 : f32
    %10 = vector.broadcast %cst_8 : f32 to vector<16x16xf32>
    %11 = arith.mulf %9, %10 : vector<16x16xf32>
    %cst_9 = arith.constant dense<0xFF800000> : vector<16xf32>
    %12 = vector.multi_reduction <maximumf>, %11, %cst_9 [1] : vector<16x16xf32> to vector<16xf32>
    %13 = vector.shape_cast %12 : vector<16xf32> to vector<16x1xf32>
    %14 = vector.broadcast %13 : vector<16x1xf32> to vector<16x16xf32>
    %15 = arith.subf %11, %14 : vector<16x16xf32>
    %16 = math.exp %15 : vector<16x16xf32>
    %cst_10 = arith.constant dense<0.000000e+00> : vector<16xf32>
    %17 = vector.multi_reduction <add>, %16, %cst_10 [1] : vector<16x16xf32> to vector<16xf32>
    %18 = vector.shape_cast %17 : vector<16xf32> to vector<16x1xf32>
    %19 = tpu.reciprocal %18 {approx = true} : vector<16x1xf32> -> vector<16x1xf32>
    %20 = vector.broadcast %19 : vector<16x1xf32> to vector<16x16xf32>
    %21 = arith.mulf %16, %20 : vector<16x16xf32>
    %cst_11 = arith.constant dense<0.000000e+00> : vector<16x32xf32>
    %22 = tpu.matmul %21, %8, %cst_11 {dimension_numbers = #tpu.dot_dimension_numbers<[1], [0], [0], [1], [0, 0, 1, 1], [], []>} : vector<16x16xf32>, vector<16x32xf32>, vector<16x32xf32> -> vector<16x32xf32>
    %23 = vector.extract_strided_slice %4 {offsets = [0, 0], sizes = [32, 128], strides = [1, 1]} : vector<128x128xf32> to vector<32x128xf32>
    %cst_12 = arith.constant dense<0.000000e+00> : vector<16x128xf32>
    %24 = tpu.matmul %22, %23, %cst_12 {dimension_numbers = #tpu.dot_dimension_numbers<[1], [0], [0], [1], [0, 0, 1, 1], [], []>} : vector<16x32xf32>, vector<32x128xf32>, vector<16x128xf32> -> vector<16x128xf32>
    %25 = arith.addf %5, %24 : vector<16x128xf32>
    %26 = vector.extract_strided_slice %1 {offsets = [0, 32], sizes = [16, 32], strides = [1, 1]} : vector<16x384xf32> to vector<16x32xf32>
    %27 = vector.extract_strided_slice %1 {offsets = [0, 160], sizes = [16, 32], strides = [1, 1]} : vector<16x384xf32> to vector<16x32xf32>
    %28 = vector.extract_strided_slice %1 {offsets = [0, 288], sizes = [16, 32], strides = [1, 1]} : vector<16x384xf32> to vector<16x32xf32>
    %cst_13 = arith.constant dense<0.000000e+00> : vector<16x16xf32>
    %29 = tpu.matmul %26, %27, %cst_13 {dimension_numbers = #tpu.dot_dimension_numbers<[1], [1], [0], [0], [0, 0, 1, 0], [], []>} : vector<16x32xf32>, vector<16x32xf32>, vector<16x16xf32> -> vector<16x16xf32>
    %cst_14 = arith.constant 0.176776692 : f32
    %30 = vector.broadcast %cst_14 : f32 to vector<16x16xf32>
    %31 = arith.mulf %29, %30 : vector<16x16xf32>
    %cst_15 = arith.constant dense<0xFF800000> : vector<16xf32>
    %32 = vector.multi_reduction <maximumf>, %31, %cst_15 [1] : vector<16x16xf32> to vector<16xf32>
    %33 = vector.shape_cast %32 : vector<16xf32> to vector<16x1xf32>
    %34 = vector.broadcast %33 : vector<16x1xf32> to vector<16x16xf32>
    %35 = arith.subf %31, %34 : vector<16x16xf32>
    %36 = math.exp %35 : vector<16x16xf32>
    %cst_16 = arith.constant dense<0.000000e+00> : vector<16xf32>
    %37 = vector.multi_reduction <add>, %36, %cst_16 [1] : vector<16x16xf32> to vector<16xf32>
    %38 = vector.shape_cast %37 : vector<16xf32> to vector<16x1xf32>
    %39 = tpu.reciprocal %38 {approx = true} : vector<16x1xf32> -> vector<16x1xf32>
    %40 = vector.broadcast %39 : vector<16x1xf32> to vector<16x16xf32>
    %41 = arith.mulf %36, %40 : vector<16x16xf32>
    %cst_17 = arith.constant dense<0.000000e+00> : vector<16x32xf32>
    %42 = tpu.matmul %41, %28, %cst_17 {dimension_numbers = #tpu.dot_dimension_numbers<[1], [0], [0], [1], [0, 0, 1, 1], [], []>} : vector<16x16xf32>, vector<16x32xf32>, vector<16x32xf32> -> vector<16x32xf32>
    %43 = vector.extract_strided_slice %4 {offsets = [32, 0], sizes = [32, 128], strides = [1, 1]} : vector<128x128xf32> to vector<32x128xf32>
    %cst_18 = arith.constant dense<0.000000e+00> : vector<16x128xf32>
    %44 = tpu.matmul %42, %43, %cst_18 {dimension_numbers = #tpu.dot_dimension_numbers<[1], [0], [0], [1], [0, 0, 1, 1], [], []>} : vector<16x32xf32>, vector<32x128xf32>, vector<16x128xf32> -> vector<16x128xf32>
    %45 = arith.addf %25, %44 : vector<16x128xf32>
    %46 = vector.extract_strided_slice %1 {offsets = [0, 64], sizes = [16, 32], strides = [1, 1]} : vector<16x384xf32> to vector<16x32xf32>
    %47 = vector.extract_strided_slice %1 {offsets = [0, 192], sizes = [16, 32], strides = [1, 1]} : vector<16x384xf32> to vector<16x32xf32>
    %48 = vector.extract_strided_slice %1 {offsets = [0, 320], sizes = [16, 32], strides = [1, 1]} : vector<16x384xf32> to vector<16x32xf32>
    %cst_19 = arith.constant dense<0.000000e+00> : vector<16x16xf32>
    %49 = tpu.matmul %46, %47, %cst_19 {dimension_numbers = #tpu.dot_dimension_numbers<[1], [1], [0], [0], [0, 0, 1, 0], [], []>} : vector<16x32xf32>, vector<16x32xf32>, vector<16x16xf32> -> vector<16x16xf32>
    %cst_20 = arith.constant 0.176776692 : f32
    %50 = vector.broadcast %cst_20 : f32 to vector<16x16xf32>
    %51 = arith.mulf %49, %50 : vector<16x16xf32>
    %cst_21 = arith.constant dense<0xFF800000> : vector<16xf32>
    %52 = vector.multi_reduction <maximumf>, %51, %cst_21 [1] : vector<16x16xf32> to vector<16xf32>
    %53 = vector.shape_cast %52 : vector<16xf32> to vector<16x1xf32>
    %54 = vector.broadcast %53 : vector<16x1xf32> to vector<16x16xf32>
    %55 = arith.subf %51, %54 : vector<16x16xf32>
    %56 = math.exp %55 : vector<16x16xf32>
    %cst_22 = arith.constant dense<0.000000e+00> : vector<16xf32>
    %57 = vector.multi_reduction <add>, %56, %cst_22 [1] : vector<16x16xf32> to vector<16xf32>
    %58 = vector.shape_cast %57 : vector<16xf32> to vector<16x1xf32>
    %59 = tpu.reciprocal %58 {approx = true} : vector<16x1xf32> -> vector<16x1xf32>
    %60 = vector.broadcast %59 : vector<16x1xf32> to vector<16x16xf32>
    %61 = arith.mulf %56, %60 : vector<16x16xf32>
    %cst_23 = arith.constant dense<0.000000e+00> : vector<16x32xf32>
    %62 = tpu.matmul %61, %48, %cst_23 {dimension_numbers = #tpu.dot_dimension_numbers<[1], [0], [0], [1], [0, 0, 1, 1], [], []>} : vector<16x16xf32>, vector<16x32xf32>, vector<16x32xf32> -> vector<16x32xf32>
    %63 = vector.extract_strided_slice %4 {offsets = [64, 0], sizes = [32, 128], strides = [1, 1]} : vector<128x128xf32> to vector<32x128xf32>
    %cst_24 = arith.constant dense<0.000000e+00> : vector<16x128xf32>
    %64 = tpu.matmul %62, %63, %cst_24 {dimension_numbers = #tpu.dot_dimension_numbers<[1], [0], [0], [1], [0, 0, 1, 1], [], []>} : vector<16x32xf32>, vector<32x128xf32>, vector<16x128xf32> -> vector<16x128xf32>
    %65 = arith.addf %45, %64 : vector<16x128xf32>
    %66 = vector.extract_strided_slice %1 {offsets = [0, 96], sizes = [16, 32], strides = [1, 1]} : vector<16x384xf32> to vector<16x32xf32>
    %67 = vector.extract_strided_slice %1 {offsets = [0, 224], sizes = [16, 32], strides = [1, 1]} : vector<16x384xf32> to vector<16x32xf32>
    %68 = vector.extract_strided_slice %1 {offsets = [0, 352], sizes = [16, 32], strides = [1, 1]} : vector<16x384xf32> to vector<16x32xf32>
    %cst_25 = arith.constant dense<0.000000e+00> : vector<16x16xf32>
    %69 = tpu.matmul %66, %67, %cst_25 {dimension_numbers = #tpu.dot_dimension_numbers<[1], [1], [0], [0], [0, 0, 1, 0], [], []>} : vector<16x32xf32>, vector<16x32xf32>, vector<16x16xf32> -> vector<16x16xf32>
    %cst_26 = arith.constant 0.176776692 : f32
    %70 = vector.broadcast %cst_26 : f32 to vector<16x16xf32>
    %71 = arith.mulf %69, %70 : vector<16x16xf32>
    %cst_27 = arith.constant dense<0xFF800000> : vector<16xf32>
    %72 = vector.multi_reduction <maximumf>, %71, %cst_27 [1] : vector<16x16xf32> to vector<16xf32>
    %73 = vector.shape_cast %72 : vector<16xf32> to vector<16x1xf32>
    %74 = vector.broadcast %73 : vector<16x1xf32> to vector<16x16xf32>
    %75 = arith.subf %71, %74 : vector<16x16xf32>
    %76 = math.exp %75 : vector<16x16xf32>
    %cst_28 = arith.constant dense<0.000000e+00> : vector<16xf32>
    %77 = vector.multi_reduction <add>, %76, %cst_28 [1] : vector<16x16xf32> to vector<16xf32>
    %78 = vector.shape_cast %77 : vector<16xf32> to vector<16x1xf32>
    %79 = tpu.reciprocal %78 {approx = true} : vector<16x1xf32> -> vector<16x1xf32>
    %80 = vector.broadcast %79 : vector<16x1xf32> to vector<16x16xf32>
    %81 = arith.mulf %76, %80 : vector<16x16xf32>
    %cst_29 = arith.constant dense<0.000000e+00> : vector<16x32xf32>
    %82 = tpu.matmul %81, %68, %cst_29 {dimension_numbers = #tpu.dot_dimension_numbers<[1], [0], [0], [1], [0, 0, 1, 1], [], []>} : vector<16x16xf32>, vector<16x32xf32>, vector<16x32xf32> -> vector<16x32xf32>
    %83 = vector.extract_strided_slice %4 {offsets = [96, 0], sizes = [32, 128], strides = [1, 1]} : vector<128x128xf32> to vector<32x128xf32>
    %cst_30 = arith.constant dense<0.000000e+00> : vector<16x128xf32>
    %84 = tpu.matmul %82, %83, %cst_30 {dimension_numbers = #tpu.dot_dimension_numbers<[1], [0], [0], [1], [0, 0, 1, 1], [], []>} : vector<16x32xf32>, vector<32x128xf32>, vector<16x128xf32> -> vector<16x128xf32>
    %85 = arith.addf %65, %84 : vector<16x128xf32>
    %c0_31 = arith.constant 0 : index
    %c0_32 = arith.constant 0 : index
    %86 = vector.load %arg4[%c0_31, %c0_32] : memref<1x128xf32, #tpu.memory_space<vmem>>, vector<1x128xf32>
    %87 = vector.broadcast %86 : vector<1x128xf32> to vector<16x128xf32>
    %88 = arith.addf %85, %87 : vector<16x128xf32>
    %c0_33 = arith.constant 0 : index
    %c0_34 = arith.constant 0 : index
    %89 = vector.load %arg5[%c0_33, %c0_34] : memref<1x128xf32, #tpu.memory_space<vmem>>, vector<1x128xf32>
    %cst_35 = arith.constant dense<0.000000e+00> : vector<1x16xf32>
    %90 = tpu.matmul %89, %88, %cst_35 {dimension_numbers = #tpu.dot_dimension_numbers<[1], [1], [0], [0], [0, 0, 1, 0], [], []>} : vector<1x128xf32>, vector<16x128xf32>, vector<1x16xf32> -> vector<1x16xf32>
    %c0_36 = arith.constant 0 : index
    %c0_37 = arith.constant 0 : index
    %91 = vector.load %arg6[%c0_36, %c0_37] : memref<1x1xf32, #tpu.memory_space<vmem>>, vector<1x1xf32>
    %92 = vector.broadcast %91 : vector<1x1xf32> to vector<1x16xf32>
    %93 = arith.addf %90, %92 : vector<1x16xf32>
    %cst_38 = arith.constant dense<0xFF800000> : vector<1xf32>
    %94 = vector.multi_reduction <maximumf>, %93, %cst_38 [1] : vector<1x16xf32> to vector<1xf32>
    %95 = vector.shape_cast %94 : vector<1xf32> to vector<1x1xf32>
    %96 = vector.broadcast %95 : vector<1x1xf32> to vector<1x16xf32>
    %97 = arith.subf %93, %96 : vector<1x16xf32>
    %98 = math.exp %97 : vector<1x16xf32>
    %cst_39 = arith.constant dense<0.000000e+00> : vector<1xf32>
    %99 = vector.multi_reduction <add>, %98, %cst_39 [1] : vector<1x16xf32> to vector<1xf32>
    %100 = vector.shape_cast %99 : vector<1xf32> to vector<1x1xf32>
    %101 = tpu.reciprocal %100 {approx = true} : vector<1x1xf32> -> vector<1x1xf32>
    %102 = vector.broadcast %101 : vector<1x1xf32> to vector<1x16xf32>
    %103 = arith.mulf %98, %102 : vector<1x16xf32>
    %cst_40 = arith.constant dense<0.000000e+00> : vector<1x128xf32>
    %104 = tpu.matmul %103, %3, %cst_40 {dimension_numbers = #tpu.dot_dimension_numbers<[1], [0], [0], [1], [0, 0, 1, 1], [], []>} : vector<1x16xf32>, vector<16x128xf32>, vector<1x128xf32> -> vector<1x128xf32>
    %c0_41 = arith.constant 0 : index
    %c0_42 = arith.constant 0 : index
    %105 = vector.load %arg7[%c0_41, %c0_42] : memref<128x128xf32, #tpu.memory_space<vmem>>, vector<128x128xf32>
    %cst_43 = arith.constant dense<0.000000e+00> : vector<1x128xf32>
    %106 = tpu.matmul %104, %105, %cst_43 {dimension_numbers = #tpu.dot_dimension_numbers<[1], [0], [0], [1], [0, 0, 1, 1], [], []>} : vector<1x128xf32>, vector<128x128xf32>, vector<1x128xf32> -> vector<1x128xf32>
    %c0_44 = arith.constant 0 : index
    %c0_45 = arith.constant 0 : index
    %107 = vector.load %arg8[%c0_44, %c0_45] : memref<1x128xf32, #tpu.memory_space<vmem>>, vector<1x128xf32>
    %108 = arith.addf %106, %107 : vector<1x128xf32>
    %c0_46 = arith.constant 0 : index
    %c0_47 = arith.constant 0 : index
    %c0_48 = arith.constant 0 : index
    %109 = vector.load %arg9[%c0_46, %c0_47, %c0_48] : memref<1x1x128xf32, #tpu.memory_space<vmem>>, vector<1x1x128xf32>
    %110 = vector.shape_cast %109 : vector<1x1x128xf32> to vector<1x128xf32>
    %111 = vector.shape_cast %108 : vector<1x128xf32> to vector<1x1x128xf32>
    tpu.vector_store %arg9[%c0_46, %c0_47, %c0_48], %111 {strides = array<i32>} : memref<1x1x128xf32, #tpu.memory_space<vmem>>, vector<1x1x128xf32>,
    %c0_49 = arith.constant 0 : index
    %c0_50 = arith.constant 0 : index
    %c0_51 = arith.constant 0 : index
    %112 = vector.load %arg10[%c0_49, %c0_50, %c0_51] : memref<1x1x16xf32, #tpu.memory_space<vmem>>, vector<1x1x16xf32>
    %113 = vector.shape_cast %112 : vector<1x1x16xf32> to vector<1x16xf32>
    %114 = vector.shape_cast %103 : vector<1x16xf32> to vector<1x1x16xf32>
    tpu.vector_store %arg10[%c0_49, %c0_50, %c0_51], %114 {strides = array<i32>} : memref<1x1x16xf32, #tpu.memory_space<vmem>>, vector<1x1x16xf32>,
    return
  }
  func.func @transform_0(%arg0: i32) -> (i32, i32, i32) {
    %c0_i32 = arith.constant 0 : i32
    %c0_i32_0 = arith.constant 0 : i32
    %c0_i32_1 = arith.constant 0 : i32
    return %arg0, %c0_i32, %c0_i32_0 : i32, i32, i32
  }
  func.func @transform_1(%arg0: i32) -> (i32, i32, i32) {
    %c0_i32 = arith.constant 0 : i32
    %c0_i32_0 = arith.constant 0 : i32
    %c0_i32_1 = arith.constant 0 : i32
    return %arg0, %c0_i32, %c0_i32_0 : i32, i32, i32
  }
  func.func @transform_2(%arg0: i32) -> (i32, i32) {
    %c0_i32 = arith.constant 0 : i32
    %c0_i32_0 = arith.constant 0 : i32
    %c0_i32_1 = arith.constant 0 : i32
    return %c0_i32, %c0_i32_0 : i32, i32
  }
  func.func @transform_3(%arg0: i32) -> (i32, i32) {
    %c0_i32 = arith.constant 0 : i32
    %c0_i32_0 = arith.constant 0 : i32
    %c0_i32_1 = arith.constant 0 : i32
    return %c0_i32, %c0_i32_0 : i32, i32
  }
  func.func @transform_4(%arg0: i32) -> (i32, i32) {
    %c0_i32 = arith.constant 0 : i32
    %c0_i32_0 = arith.constant 0 : i32
    %c0_i32_1 = arith.constant 0 : i32
    return %c0_i32, %c0_i32_0 : i32, i32
  }
  func.func @transform_5(%arg0: i32) -> (i32, i32) {
    %c0_i32 = arith.constant 0 : i32
    %c0_i32_0 = arith.constant 0 : i32
    %c0_i32_1 = arith.constant 0 : i32
    return %c0_i32, %c0_i32_0 : i32, i32
  }
  func.func @transform_6(%arg0: i32) -> (i32, i32) {
    %c0_i32 = arith.constant 0 : i32
    %c0_i32_0 = arith.constant 0 : i32
    %c0_i32_1 = arith.constant 0 : i32
    return %c0_i32, %c0_i32_0 : i32, i32
  }
  func.func @transform_7(%arg0: i32) -> (i32, i32) {
    %c0_i32 = arith.constant 0 : i32
    %c0_i32_0 = arith.constant 0 : i32
    %c0_i32_1 = arith.constant 0 : i32
    return %c0_i32, %c0_i32_0 : i32, i32
  }
  func.func @transform_8(%arg0: i32) -> (i32, i32, i32) {
    %c0_i32 = arith.constant 0 : i32
    %c0_i32_0 = arith.constant 0 : i32
    %c0_i32_1 = arith.constant 0 : i32
    return %arg0, %c0_i32, %c0_i32_0 : i32, i32, i32
  }
  func.func @transform_9(%arg0: i32) -> (i32, i32, i32) {
    %c0_i32 = arith.constant 0 : i32
    %c0_i32_0 = arith.constant 0 : i32
    %c0_i32_1 = arith.constant 0 : i32
    return %arg0, %c0_i32, %c0_i32_0 : i32, i32, i32
  }
}

</mosaic_0001>

<bundles_post_ra>
// kernel: attention_pooling_forward.2
= control target key start
LH: loop header
LB: loop body
LE: loop exit
PB: predicated region body
PF: predicated region fallthrough
CT: control target
= control target key end

     0   :  { %8 = vsyncpa [#allocation3], 0  ;;  %s567_s0 = inlined_call_operand.hbm [shape: f32[32,128], index: 0, kind: input, shape index: {}]   ;;  %s568_s1 = inlined_call_operand.hbm [shape: f32[128,384], index: 1, kind: input, shape index: {}]   ;;  %s569_s2 = inlined_call_operand.vmem [shape: f32[1,384], index: 2, kind: input, shape index: {}]   ;;  %s570_s3 = inlined_call_operand.vmem [shape: f32[32,384], index: 3, kind: output, shape index: {}]  }
   0x1   :  { %9 = vsyncpa [#allocation5], 0  ;;  %s491_s12 = smov [#allocation2]  }
   0x2   :  { %s15_s13 = sshll.u32 %s491_s12, 4  ;;  %s16_s13 = int_to_ptr.vmem [resolvable:$true] %s15_s13 }
   0x3   :  { %s455_s14 = scalar_lea.vmem %s16_s13, 512  ;;  %p460_p1 = scmp.lt.s32.totalorder %s16_s13, %s16_s13 }
   0x4   :  { %p456_p0 = scmp.ne.s32.totalorder %s16_s13, %s455_s14  ;;  %p461_p2 = scmp.lt.s32.totalorder %s455_s14, %s455_s14 }
   0x6   :  { %p462_p3 = por %p461_p2, %p460_p1 }
   0x8   :  { %p463_p4 = pnand %p462_p3, %p456_p0 }
   0xa   :  { %466 = shalt.err (!%p463_p4)
}
   0xb   :  { %s492_s15 = smov 128   ;;  %s493_s16 = smov 8  }
   0xc   :  { %21 = dma.hbm_to_vmem [thread:$0]  %s567_s0, 512, %s16_s13, [#allocation3], %s492_s15, %s492_s15, %s493_s16  }
   0xd   :  { %s494_s19 = smov [#allocation4]  }
   0xe   :  { %s27_s20 = sshll.u32 %s494_s19, 4  ;;  %s28_s20 = int_to_ptr.vmem [resolvable:$true] %s27_s20 }
   0xf   :  { %s475_s21 = scalar_lea.vmem %s28_s20, 6144  ;;  %p480_p6 = scmp.lt.s32.totalorder %s28_s20, %s28_s20 }
  0x10   :  { %p476_p5 = scmp.ne.s32.totalorder %s28_s20, %s475_s21  ;;  %p481_p7 = scmp.lt.s32.totalorder %s475_s21, %s475_s21 }
  0x12   :  { %p482_p8 = por %p481_p7, %p480_p6 }
  0x14   :  { %p483_p9 = pnand %p482_p8, %p476_p5 }
  0x16   :  { %486 = shalt.err (!%p483_p9)
}
  0x17   :  { %s495_s22 = smov 384   ;;  %s496_s23 = smov 24  }
  0x18   :  { %33 = dma.hbm_to_vmem [thread:$0]  %s568_s1, 6144, %s28_s20, [#allocation5], %s495_s22, %s495_s22, %s496_s23  }
  0x19   :  { %487 = dma.done.wait [#allocation3], 512  }
  0x1a   :  { %488 = vsyncadd [#allocation3], 4294966784 }
  0x1b   :  { %489 = dma.done.wait [#allocation5], 6144  }
  0x1c   :  { %490 = vsyncadd [#allocation5], 4294961152  ;;  %v497_v0 = vmov 0.0   ;;  %v120_v1 = vld [vmem:[#allocation4 + $0x170] sm:$0xff]  ;;  %v119_v2 = vld [vmem:[#allocation4 + $0x168] sm:$0xff]  ;;  %v337_v53 = vlaneseq }
  0x1d   :  { %186 = vmatprep.mubr.f32.mxu0 %v497_v0  ;;  %v117_v3 = vld [vmem:[#allocation4 + $0x158] sm:$0xff]  ;;  %122 = vmatprep.subr.mxu0 %v120_v1  ;;  %v116_v4 = vld [vmem:[#allocation4 + $0x150] sm:$0xff]  ;;  %v114_v5 = vld [vmem:[#allocation4 + $0x140] sm:$0xff] }
  0x1e   :  { %123 = vmatpush1.msra.mxu0 %v119_v2  ;;  %v121_v6 = vld [vmem:[#allocation4 + $0x178] sm:$0xff]  ;;  %v118_v8 = vld [vmem:[#allocation4 + $0x160] sm:$0xff]  ;;  %v111_v9 = vld [vmem:[#allocation4 + $0x128] sm:$0xff]  ;;  %v338_v54 = vshrl.u32 %v337_v53, 7 }
  0x1f   :  { %124 = vmatprep.subr.mxu0 %v117_v3  ;;  %v113_v7 = vld [vmem:[#allocation4 + $0x138] sm:$0xff]  ;;  %402 = vmatprep.subr.mxu1 %v121_v6  ;;  %v115_v10 = vld [vmem:[#allocation4 + $0x148] sm:$0xff]  ;;  %v110_v11 = vld [vmem:[#allocation4 + $0x120] sm:$0xff] }
  0x20   :  { %125 = vmatpush1.msra.mxu0 %v116_v4  ;;  %403 = vmatpush3.msra.mxu1 %v121_v6  ;;  %v108_v12 = vld [vmem:[#allocation4 + $0x110] sm:$0xff]  ;;  %v107_v14 = vld [vmem:[#allocation4 + $0x108] sm:$0xff]  ;;  %v105_v15 = vld [vmem:[#allocation4 + $0xf8] sm:$0xff]  ;;  %v339_v55 = vsub.s32 0, %v338_v54  ;;  %v343_v57 = vsub.s32 1, %v338_v54  ;;  %v347_v58 = vsub.s32 2, %v338_v54 }
  0x21   :  { %126 = vmatprep.subr.mxu0 %v114_v5  ;;  %404 = vmatprep.subr.mxu1 %v118_v8  ;;  %v112_v13 = vld [vmem:[#allocation4 + $0x130] sm:$0xff]  ;;  %v109_v16 = vld [vmem:[#allocation4 + $0x118] sm:$0xff]  ;;  %v102_v18 = vld [vmem:[#allocation4 + $0xe0] sm:$0xff] }
  0x22   :  { %127 = vmatpush1.msra.mxu0 %v113_v7  ;;  %405 = vmatpush3.msra.mxu1 %v118_v8  ;;  %v104_v17 = vld [vmem:[#allocation4 + $0xf0] sm:$0xff]  ;;  %v106_v19 = vld [vmem:[#allocation4 + $0x100] sm:$0xff]  ;;  %v101_v20 = vld [vmem:[#allocation4 + $0xd8] sm:$0xff] }
  0x23   :  { %128 = vmatprep.subr.mxu0 %v111_v9  ;;  %406 = vmatprep.subr.mxu1 %v115_v10  ;;  %v99_v21 = vld [vmem:[#allocation4 + $0xc8] sm:$0xff]  ;;  %v98_v23 = vld [vmem:[#allocation4 + $0xc0] sm:$0xff]  ;;  %v96_v24 = vld [vmem:[#allocation4 + $0xb0] sm:$0xff] }
  0x24   :  { %129 = vmatpush1.msra.mxu0 %v110_v11  ;;  %407 = vmatpush3.msra.mxu1 %v115_v10  ;;  %v103_v22 = vld [vmem:[#allocation4 + $0xe8] sm:$0xff]  ;;  %v100_v25 = vld [vmem:[#allocation4 + $0xd0] sm:$0xff]  ;;  %v93_v27 = vld [vmem:[#allocation4 + $0x98] sm:$0xff] }
  0x25   :  { %130 = vmatprep.subr.mxu0 %v108_v12  ;;  %408 = vmatprep.subr.mxu1 %v112_v13  ;;  %v95_v26 = vld [vmem:[#allocation4 + $0xa8] sm:$0xff]  ;;  %v97_v28 = vld [vmem:[#allocation4 + $0xb8] sm:$0xff]  ;;  %v92_v29 = vld [vmem:[#allocation4 + $0x90] sm:$0xff] }
  0x26   :  { %131 = vmatpush1.msra.mxu0 %v107_v14  ;;  %409 = vmatpush3.msra.mxu1 %v112_v13  ;;  %v90_v30 = vld [vmem:[#allocation4 + $0x80] sm:$0xff]  ;;  %v89_v32 = vld [vmem:[#allocation4 + $0x78] sm:$0xff]  ;;  %v87_v33 = vld [vmem:[#allocation4 + $0x68] sm:$0xff] }
  0x27   :  { %132 = vmatprep.subr.mxu0 %v105_v15  ;;  %410 = vmatprep.subr.mxu1 %v109_v16  ;;  %v94_v31 = vld [vmem:[#allocation4 + $0xa0] sm:$0xff]  ;;  %v91_v34 = vld [vmem:[#allocation4 + $0x88] sm:$0xff]  ;;  %v84_v36 = vld [vmem:[#allocation4 + $0x50] sm:$0xff] }
  0x28   :  { %133 = vmatpush1.msra.mxu0 %v104_v17  ;;  %411 = vmatpush3.msra.mxu1 %v109_v16  ;;  %v86_v35 = vld [vmem:[#allocation4 + $0x60] sm:$0xff]  ;;  %v88_v37 = vld [vmem:[#allocation4 + $0x70] sm:$0xff]  ;;  %v83_v38 = vld [vmem:[#allocation4 + $0x48] sm:$0xff] }
  0x29   :  { %134 = vmatprep.subr.mxu0 %v102_v18  ;;  %412 = vmatprep.subr.mxu1 %v106_v19  ;;  %v81_v39 = vld [vmem:[#allocation4 + $0x38] sm:$0xff]  ;;  %v80_v41 = vld [vmem:[#allocation4 + $0x30] sm:$0xff]  ;;  %v78_v42 = vld [vmem:[#allocation4 + $0x20] sm:$0xff] }
  0x2a   :  { %135 = vmatpush1.msra.mxu0 %v101_v20  ;;  %413 = vmatpush3.msra.mxu1 %v106_v19  ;;  %v85_v40 = vld [vmem:[#allocation4 + $0x58] sm:$0xff]  ;;  %v82_v43 = vld [vmem:[#allocation4 + $0x40] sm:$0xff]  ;;  %v75_v45 = vld [vmem:[#allocation4 + $0x8] sm:$0xff] }
  0x2b   :  { %136 = vmatprep.subr.mxu0 %v99_v21  ;;  %414 = vmatprep.subr.mxu1 %v103_v22  ;;  %v77_v44 = vld [vmem:[#allocation4 + $0x18] sm:$0xff]  ;;  %v79_v46 = vld [vmem:[#allocation4 + $0x28] sm:$0xff]  ;;  %v74_v47 = vld [vmem:[#allocation4] sm:$0xff] }
  0x2c   :  { %137 = vmatpush1.msra.mxu0 %v98_v23  ;;  %415 = vmatpush3.msra.mxu1 %v103_v22  ;;  %v70_v48 = vld [vmem:[#allocation2] sm:$0xff]  ;;  %v76_v49 = vld [vmem:[#allocation4 + $0x10] sm:$0xff]  ;;  %v71_v50 = vld [vmem:[#allocation2 + $0x8] sm:$0xff] }
  0x2d   :  { %138 = vmatprep.subr.mxu0 %v96_v24  ;;  %416 = vmatprep.subr.mxu1 %v100_v25  ;;  %v72_v51 = vld [vmem:[#allocation2 + $0x10] sm:$0xff]  ;;  %v73_v52 = vld [vmem:[#allocation2 + $0x18] sm:$0xff]  ;;  %v335_v56 = vld [vmem:[%s569_s2] sm:$0x7] }
  0x2e   :  { %139 = vmatpush1.msra.mxu0 %v95_v26  ;;  %417 = vmatpush3.msra.mxu1 %v100_v25  ;;  %v340_v59 = vrot.slane %v335_v56, %v339_v55  ;;  %v344_v61 = vrot.slane %v335_v56, %v343_v57  ;;  %v348_v63 = vrot.slane %v335_v56, %v347_v58 }
  0x2f   :  { %140 = vmatprep.subr.mxu0 %v93_v27  ;;  %418 = vmatprep.subr.mxu1 %v97_v28 }
  0x30   :  { %141 = vmatpush1.msra.mxu0 %v92_v29  ;;  %419 = vmatpush3.msra.mxu1 %v97_v28 }
  0x31   :  { %142 = vmatprep.subr.mxu0 %v90_v30  ;;  %420 = vmatprep.subr.mxu1 %v94_v31 }
  0x32   :  { %143 = vmatpush1.msra.mxu0 %v89_v32  ;;  %421 = vmatpush3.msra.mxu1 %v94_v31 }
  0x33   :  { %144 = vmatprep.subr.mxu0 %v87_v33  ;;  %422 = vmatprep.subr.mxu1 %v91_v34 }
  0x34   :  { %145 = vmatpush1.msra.mxu0 %v86_v35  ;;  %423 = vmatpush3.msra.mxu1 %v91_v34 }
  0x35   :  { %146 = vmatprep.subr.mxu0 %v84_v36  ;;  %424 = vmatprep.subr.mxu1 %v88_v37 }
  0x36   :  { %147 = vmatpush1.msra.mxu0 %v83_v38  ;;  %425 = vmatpush3.msra.mxu1 %v88_v37 }
  0x37   :  { %148 = vmatprep.subr.mxu0 %v81_v39  ;;  %426 = vmatprep.subr.mxu1 %v85_v40 }
  0x38   :  { %149 = vmatpush1.msra.mxu0 %v80_v41  ;;  %427 = vmatpush3.msra.mxu1 %v85_v40 }
  0x39   :  { %150 = vmatprep.subr.mxu0 %v78_v42  ;;  %428 = vmatprep.subr.mxu1 %v82_v43 }
  0x3a   :  { %151 = vmatpush1.msra.mxu0 %v77_v44  ;;  %429 = vmatpush3.msra.mxu1 %v82_v43 }
  0x3b   :  { %152 = vmatprep.subr.mxu0 %v75_v45  ;;  %430 = vmatprep.subr.mxu1 %v79_v46 }
  0x3c   :  { %153 = vmatpush1.msra.mxu0 %v74_v47  ;;  %431 = vmatpush3.msra.mxu1 %v79_v46 }
  0x3d   :  { %187 = vmatmul.mubr.f32.vlgmr.msra.gmra.mxu0 %v70_v48  ;;  %432 = vmatprep.subr.mxu1 %v76_v49 }
  0x3e   :  { %192 = vmatprep.mubr.f32.mxu0 %v497_v0  ;;  %433 = vmatpush3.msra.mxu1 %v76_v49 }
  0x3f   :  { %434 = vmatprep.mubr.f32.mxu1 %v70_v48 }
  0x40   :  { %435 = vmatmul.mubr.f32.vlgmr.msra.gmra.mxu1 %v71_v50 }
  0x41   :  { %193 = vmatmul.mubr.f32.gmra.mxu0 %v71_v50  ;;  %437 = vmatprep.mubr.f32.mxu1 %v72_v51 }
  0x42   :  { %198 = vmatprep.mubr.f32.mxu0 %v497_v0 }
  0x44   :  { %438 = vmatmul.mubr.f32.gmra.mxu1 %v73_v52 }
  0x45   :  { %199 = vmatmul.mubr.f32.gmra.mxu0 %v72_v51 }
  0x46   :  { %204 = vmatprep.mubr.f32.mxu0 %v497_v0 }
  0x49   :  { %205 = vmatmul.mubr.f32.gmra.mxu0 %v73_v52 }
  0xfd   :  { %v188_v60 = vpop.f32.mrf.mxu0 }
  0xfe   :  { %v352_v1 = vadd.f32 %v340_v59, %v188_v60 }
  0xff   :  { %v190_v62 = vpop.f32.mrf.mxu0 }
 0x100   :  { %v436_v2 = vpop.f32.mrf.mxu1  ;;  %364 = vst [vmem:[%s570_s3] sm:$0xff] %v352_v1  ;;  %v353_v0 = vadd.f32 %v344_v61, %v190_v62 }
 0x101   :  { %v194_v3 = vpop.f32.mrf.mxu0  ;;  %v357_v6 = vadd.f32 %v436_v2, %v348_v63 }
 0x102   :  { %v277_v4 = vpop.f32.mrf.mxu1  ;;  %365 = vst [vmem:[%s570_s3 + $0x8] sm:$0xff] %v353_v0  ;;  %v355_v7 = vadd.f32 %v340_v59, %v194_v3 }
 0x103   :  { %v196_v5 = vpop.f32.mrf.mxu0  ;;  %369 = vst [vmem:[%s570_s3 + $0x28] sm:$0xff] %v357_v6  ;;  %v354_v10 = vadd.f32 %v348_v63, %v277_v4 }
 0x104   :  { %v439_v8 = vpop.f32.mrf.mxu1  ;;  %367 = vst [vmem:[%s570_s3 + $0x18] sm:$0xff] %v355_v7  ;;  %v356_v11 = vadd.f32 %v344_v61, %v196_v5 }
 0x105   :  { %v200_v9 = vpop.f32.mrf.mxu0  ;;  %366 = vst [vmem:[%s570_s3 + $0x10] sm:$0xff] %v354_v10  ;;  %v363_v14 = vadd.f32 %v439_v8, %v348_v63 }
 0x106   :  { %v287_v12 = vpop.f32.mrf.mxu1  ;;  %368 = vst [vmem:[%s570_s3 + $0x20] sm:$0xff] %v356_v11  ;;  %v358_v15 = vadd.f32 %v340_v59, %v200_v9 }
 0x107   :  { %v202_v13 = vpop.f32.mrf.mxu0  ;;  %375 = vst [vmem:[%s570_s3 + $0x58] sm:$0xff] %v363_v14  ;;  %v360_v17 = vadd.f32 %v348_v63, %v287_v12 }
 0x108   :  { %370 = vst [vmem:[%s570_s3 + $0x30] sm:$0xff] %v358_v15  ;;  %v359_v18 = vadd.f32 %v344_v61, %v202_v13 }
 0x109   :  { %v206_v16 = vpop.f32.mrf.mxu0  ;;  %372 = vst [vmem:[%s570_s3 + $0x40] sm:$0xff] %v360_v17 }
 0x10a   :  { %371 = vst [vmem:[%s570_s3 + $0x38] sm:$0xff] %v359_v18  ;;  %v361_v20 = vadd.f32 %v340_v59, %v206_v16 }
 0x10b   :  { %v208_v19 = vpop.f32.mrf.mxu0 }
 0x10c   :  { %373 = vst [vmem:[%s570_s3 + $0x48] sm:$0xff] %v361_v20  ;;  %v362_v21 = vadd.f32 %v344_v61, %v208_v19 }
 0x10e   :  { %374 = vst [vmem:[%s570_s3 + $0x50] sm:$0xff] %v362_v21 }
 0x10f   :  { %380 = vsyncpa [#allocation3], 1 }
 0x110   :  { %381 = vsyncpa [#allocation5], 1 }

// kernel: attention_pooling_forward.3
= control target key start
LH: loop header
LB: loop body
LE: loop exit
PB: predicated region body
PF: predicated region fallthrough
CT: control target
= control target key end

     0   :  { %s2809_s0 = inlined_call_operand.vmem [shape: f32[2,16,384], index: 0, kind: input, shape index: {}]   ;;  %s2810_s1 = inlined_call_operand.vmem [shape: f32[2,16,128], index: 1, kind: input, shape index: {}]   ;;  %s2811_s2 = inlined_call_operand.vmem [shape: f32[128,128], index: 2, kind: input, shape index: {}]   ;;  %s2812_s3 = inlined_call_operand.vmem [shape: f32[1,128], index: 3, kind: input, shape index: {}]   ;;  %s2813_s4 = inlined_call_operand.vmem [shape: f32[1,128], index: 4, kind: input, shape index: {}]   ;;  %s2814_s5 = inlined_call_operand.<no memory space> [shape: f32[1,1], index: 5, kind: input, shape index: {}]   ;;  %s2815_s6 = inlined_call_operand.vmem [shape: f32[128,128], index: 6, kind: input, shape index: {}]   ;;  %s2816_s7 = inlined_call_operand.vmem [shape: f32[1,128], index: 7, kind: input, shape index: {}]   ;;  %s2817_s8 = inlined_call_operand.hbm [shape: f32[2,1,128], index: 8, kind: output, shape index: {0}]   ;;  %s2818_s9 = inlined_call_operand.hbm [shape: f32[2,1,16], index: 9, kind: output, shape index: {1}]  }
   0x1   :  { %2820 = sst [smem:[#allocation9_spill]] %s2809_s0  ;;  %v15_v0 = vstv %s2814_s5 }
   0x2   :  { %16 = vst [vmem:[#allocation2] sm:$0x1] %v15_v0 }
   0x3   :  { %17 = vsyncpa [#allocation4], 0 }
   0x4   :  { %19 = vsyncpa [#allocation4 + $0x1], 0 }
   0x5   :  { %20 = vsyncpa [#allocation6], 0 }
   0x6   :  { %22 = vsyncpa [#allocation6 + $0x1], 0  ;;  %s2421_s11 = smov 0   ;;  %s2423_s12 = smov 0  }
   0x7   :  { %s2425_s13 = smov 0   ;;  %s2427_s14 = smov 0  }
   0x8 LB: > { %s2442_s5 = sadd.s32 4294967295, %s2358_s14   ;;  %s1905_s15 = sadd.s32 4294967294, %s2358_s14   ;;  %s2358_s14 = sphi %s2427_s14, %s2828_s14   ;;  %s2354_s13 = sphi %s2425_s13, %s2827_s13   ;;  %s2350_s12 = sphi %s2423_s12, %s2826_s12   ;;  %s2346_s11 = sphi %s2421_s11, %s2825_s11  }
   0x9   : > { %s2446_s16 = sadd.s32 1, %s2358_s14   ;;  %s213_s17 = sadd.s32 1, %s2354_s13 }
   0xa   : > { %s210_s18 = ssub.s32 %s2358_s14, %s2446_s16  ;;  %p223_p0 = scmp.ne.s32.totalorder %s2354_s13, %s2350_s12 }
   0xb   : > { %p211_p1 = scmp.eq.s32.totalorder %s210_s18, 0  ;;  %p224_p2 = scmp.eq.s32.totalorder %s2442_s5, 1 }
   0xc   : > { %p229_p3 = scmp.ne.s32.totalorder %s2350_s12, %s2346_s11  ;;  %p230_p4 = scmp.eq.s32.totalorder %s1905_s15, 1 }
   0xd   : > { %s2457_s19 = scalar_select %p211_p1, %s2354_s13, %s213_s17  }
   0xe   : > { %p2459_p5 = por %p224_p2, %p223_p0  ;;  %p2463_p6 = por %p230_p4, %p229_p3 }
   0xf   : > { %p1908_p7 = scmp.ge.s32.totalorder %s2358_s14, 1  ;;  %p308_p8 = scmp.lt.s32.totalorder %s2358_s14, 3 }
  0x11   : > { %p309_p9 = pnand %p1908_p7, %p308_p8 }
  0x12   : > { %p352_p10 = scmp.lt.s32.totalorder (!%p309_p9), %s2442_s5, 1  ;;  %s2823_s0 = sld [smem:[#allocation9_spill]] (!%p309_p9) }
  0x13   : > { %312 = sbr.rel (%p309_p9) target bundleno = 3309 (0xced), region = 52  ;;  %s2360_s27 = smov (!%p309_p9), 96  }
  0x14   : > { %s2361_s24 = smov (!%p309_p9), 64   ;;  %s2362_s25 = smov (!%p309_p9), 32  }
  0x15   : > { %s2819_s30 = sshll.u32 (!%p309_p9), %s2442_s5, 4 }
  0x16   : > { %s1808_s15 = scalar_lea.hbm (!%p309_p9), %s2818_s9, %s2819_s30 }
  0x18   : > { %s2471_s22 = scalar_select %p352_p10, %s2442_s5, 1  ;;  %vm386_vm0 = vcmask 261120   ;;  %vm476_vm1 = vcmask 130048   ;;  %v373_v24 = vld [vmem:[%s2811_s2 + $0x18] sm:$0xff]  ;;  %v372_v25 = vld [vmem:[%s2811_s2 + $0x10] sm:$0xff]  ;;  %v371_v35 = vld [vmem:[%s2811_s2 + $0x8] sm:$0xff] }
  0x19   : > { %2069 = vmatprep.subr.mxu1 %v373_v24  ;;  %v370_v36 = vld [vmem:[%s2811_s2] sm:$0xff]  ;;  %v377_v59 = vld [vmem:[%s2811_s2 + $0x38] sm:$0xff]  ;;  %v376_v0 = vld [vmem:[%s2811_s2 + $0x30] sm:$0xff]  ;;  %vm2364_vm2 = vmmov 0   ;;  %vm1606_vm3 = vcmask 122880  }
  0x1a   : > { %s2179_s23 = smul.u32 48, %s2471_s22  ;;  %2070 = vmatpush3.msra.mxu1 %v373_v24 }
  0x1b   : > { %2071 = vmatprep.subr.mxu1 %v372_v25 }
  0x1c   : > { %s2477_s26 = scalar_lea.vmem %s2823_s0, %s2179_s23  ;;  %2072 = vmatpush3.msra.mxu1 %v372_v25 }
  0x1d   : > { %v2480_v1 = vld [vmem:[%s2477_s26 + $0x20] sm:$0xff]  ;;  %v2483_v2 = vld [vmem:[%s2477_s26 + $0x8] sm:$0xff]  ;;  %v2499_v4 = vld [vmem:[%s2477_s26 + $0x18] sm:$0xff]  ;;  %2073 = vmatprep.subr.mxu1 %v371_v35 }
  0x1e   : > { %v2486_v3 = vld [vmem:[%s2477_s26] sm:$0xff]  ;;  %2030 = vmatprep.subr.msk.mxu0 %vm386_vm0, %v2480_v1  ;;  %584 = vrot.lane.b32.xlu1 %v2483_v2, %s2360_s27  ;;  %v2514_v21 = vld [vmem:[%s2477_s26 + $0x28] sm:$0xff]  ;;  %v2517_v22 = vld [vmem:[%s2477_s26 + $0x10] sm:$0xff] }
  0x1f   : > { %2034 = vmatprep.mubr.msk.f32.mxu0 %vm386_vm0, %v2486_v3  ;;  %2031 = vmatpush3.xpose.msk.msra.mxu0 %vm386_vm0, %v2480_v1 }
  0x20   : > { %2032 = vmatprep.subr.msk.mxu0 %vm386_vm0, %v2483_v2  ;;  %2074 = vmatpush3.msra.mxu1 %v371_v35 }
  0x21   : > { %2075 = vmatprep.subr.mxu1 %v370_v36 }
  0x22   : > { %580 = vrot.lane.b32.xlu1 %v2486_v3, %s2360_s27  ;;  %2076 = vmatpush3.msra.mxu1 %v370_v36 }
  0x23   : > { %2033 = vmatpush3.xpose.msk.msra.mxu0 %vm386_vm0, %v2483_v2 }
  0x24   : > { %2037 = vmatprep.subr.mxu0 %v2514_v21 }
  0x26   : > { %2035 = vmatmul.mubr.msk.f32.vlgmr.msra.gmra.mxu0 %vm386_vm0, %v2499_v4 }
  0x27   : > { %2038 = vmatpush3.msra.mxu0 %v2514_v21 }
  0x28   : > { %2039 = vmatprep.subr.mxu0 %v2517_v22 }
  0x29   : > { %2040 = vmatpush3.msra.mxu0 %v2517_v22 }
  0x90   : > { %v585_v26 = vpop.permute.xlu1 %584 }
  0x94   : > { %v581_v27 = vpop.permute.xlu1 %580 }
  0xe6   : > { %v2036_v5 = vpop.f32.mrf.mxu0 }
  0xe7   : > { %v475_v8 = vmul.f32 0.17677669, %v2036_v5 }
  0xe8   : > { %v465_v6 = vpop.f32.mrf.mxu0 }
  0xe9   : > { %v474_v7 = vmul.f32 0.17677669, %v465_v6  ;;  %v480_v10 = vsel %vm476_vm1, %v475_v8, -inf }
  0xeb   : > { %v477_v9 = vsel %vm476_vm1, %v474_v7, -inf }
  0xec   : > { %478 = vmax.xlane.f32.xlu0 %v477_v9 }
  0xf0   : > { %481 = vmax.xlane.f32.xlu0 %v480_v10 }
 0x106   : > { %586 = vrot.lane.b32.xlu0 %v2480_v1, %s2360_s27 }
 0x175   : > { %v479_v11 = vpop.xlane.xlu0 %478 }
 0x176   : > { %v483_v12 = vsub.f32 %v474_v7, %v479_v11 }
 0x178   : > { %v485_v15 = vmul.f32 1.442695, %v483_v12 }
 0x179   : > { %v482_v13 = vpop.xlane.xlu0 %481 }
 0x17a   : > { %v484_v14 = vsub.f32 %v475_v8, %v482_v13 }
 0x17c   : > { %v487_v16 = vmul.f32 1.442695, %v484_v14 }
 0x17d   : > { %v587_v23 = vpop.permute.xlu0 %586 }
 0x17e   : > { %2232 = vpow2.f32 %v487_v16  ;;  %2044 = vmatprep.subr.msk.mxu0 %vm386_vm0, %v587_v23 }
 0x17f   : > { %2234 = vpow2.f32 %v485_v15 }
 0x18b   : > { %v2233_v17 = vpop.eup %2232 }
 0x18c   : > { %v492_v18 = vsel %vm476_vm1, %v2233_v17, 0.0  ;;  %v2235_v19 = vpop.eup %2234 }
 0x18d   : > { %493 = vadd.xlane.f32.xlu1 %v492_v18  ;;  %v489_v20 = vsel %vm476_vm1, %v2235_v19, 0.0 }
 0x191   : > { %490 = vadd.xlane.f32.xlu1 %v489_v20 }
 0x1a2   : > { %582 = vrot.lane.b32.xlu1 %v2499_v4, %s2360_s27 }
 0x216   : > { %v494_v28 = vpop.xlane.xlu1 %493 }
 0x217   : > { %2236 = vrcp.f32 %v494_v28 }
 0x21a   : > { %v491_v29 = vpop.xlane.xlu1 %490 }
 0x21b   : > { %2238 = vrcp.f32 %v491_v29 }
 0x21e   : > { %v583_v34 = vpop.permute.xlu1 %582 }
 0x224   : > { %v2237_v30 = vpop.eup %2236 }
 0x225   : > { %v498_v33 = vmul.f32 %v2237_v30, %v2233_v17 }
 0x228   : > { %v2239_v31 = vpop.eup %2238 }
 0x229   : > { %v497_v32 = vmul.f32 %v2239_v31, %v2235_v19 }
 0x22b   : > { %2041 = vmatprep.mubr.msk.f32.mxu0 %vm476_vm1, %v497_v32 }
 0x22c   : > { %2042 = vmatmul.mubr.msk.f32.vlgmr.msra.gmra.mxu0 %vm476_vm1, %v498_v33 }
 0x22d   : > { %2045 = vmatpush3.xpose.msk.msra.mxu0 %vm386_vm0, %v587_v23  ;;  %2048 = vmatprep.mubr.msk.f32.mxu0 %vm386_vm0, %v581_v27 }
 0x22e   : > { %2046 = vmatprep.subr.msk.mxu0 %vm386_vm0, %v585_v26 }
 0x231   : > { %2047 = vmatpush3.xpose.msk.msra.mxu0 %vm386_vm0, %v585_v26 }
 0x234   : > { %2049 = vmatmul.mubr.msk.f32.vlgmr.msra.gmra.mxu0 %vm386_vm0, %v583_v34 }
 0x2ec   : > { %v2043_v37 = vpop.f32.mrf.mxu0 }
 0x2ee   : > { %v571_v38 = vpop.f32.mrf.mxu0 }
 0x2ef   : > { %2077 = vmatprep.mubr.msk.f32.mxu1 %vm386_vm0, %v571_v38 }
 0x2f0   : > { %2078 = vmatmul.mubr.msk.f32.vlgmr.msra.gmra.mxu1 %vm386_vm0, %v2043_v37 }
 0x2f4   : > { %v2050_v39 = vpop.f32.mrf.mxu0 }
 0x2f5   : > { %v672_v40 = vmul.f32 0.17677669, %v2050_v39 }
 0x2f6   : > { %v662_v41 = vpop.f32.mrf.mxu0 }
 0x2f7   : > { %v671_v42 = vmul.f32 0.17677669, %v662_v41  ;;  %v676_v43 = vsel %vm476_vm1, %v672_v40, -inf }
 0x2f8   : > { %677 = vmax.xlane.f32.xlu1 %v676_v43 }
 0x2f9   : > { %v673_v44 = vsel %vm476_vm1, %v671_v42, -inf }
 0x2fa   : > { %674 = vmax.xlane.f32.xlu0 %v673_v44 }
 0x309   : > { %697 = vrot.lane.b32.xlu1 %v2517_v22, %s2360_s27 }
 0x30d   : > { %952 = vrot.lane.b32.xlu1 %v2480_v1, %s2361_s24 }
 0x311   : > { %950 = vrot.lane.b32.xlu1 %v2483_v2, %s2361_s24 }
 0x315   : > { %948 = vrot.lane.b32.xlu1 %v2499_v4, %s2361_s24 }
 0x319   : > { %1235 = vrot.lane.b32.xlu1 %v2483_v2, %s2362_s25  ;;  %v374_v2 = vld [vmem:[%s2811_s2 + $0x20] sm:$0xff] }
 0x31d   : > { %1233 = vrot.lane.b32.xlu1 %v2499_v4, %s2362_s25 }
 0x381   : > { %v678_v45 = vpop.xlane.xlu1 %677 }
 0x382   : > { %v680_v46 = vsub.f32 %v672_v40, %v678_v45 }
 0x383   : > { %v675_v47 = vpop.xlane.xlu0 %674 }
 0x384   : > { %v683_v48 = vmul.f32 1.442695, %v680_v46  ;;  %v679_v49 = vsub.f32 %v671_v42, %v675_v47 }
 0x385   : > { %v698_v58 = vpop.permute.xlu1 %697 }
 0x386   : > { %2240 = vpow2.f32 %v683_v48  ;;  %v681_v50 = vmul.f32 1.442695, %v679_v49  ;;  %v381_v48 = vld [vmem:[%s2811_s2 + $0x58] sm:$0xff] }
 0x388   : > { %2242 = vpow2.f32 %v681_v50 }
 0x393   : > { %v2241_v51 = vpop.eup %2240 }
 0x394   : > { %v688_v52 = vsel %vm476_vm1, %v2241_v51, 0.0 }
 0x395   : > { %v2243_v53 = vpop.eup %2242  ;;  %689 = vadd.xlane.f32.xlu0 %v688_v52 }
 0x396   : > { %v685_v54 = vsel %vm476_vm1, %v2243_v53, 0.0 }
 0x399   : > { %686 = vadd.xlane.f32.xlu0 %v685_v54 }
 0x3af   : > { %699 = vrot.lane.b32.xlu0 %v2514_v21, %s2360_s27 }
 0x3b3   : > { %946 = vrot.lane.b32.xlu0 %v2486_v3, %s2361_s24 }
 0x3b7   : > { %1237 = vrot.lane.b32.xlu0 %v2480_v1, %s2362_s25  ;;  %v375_v1 = vld [vmem:[%s2811_s2 + $0x28] sm:$0xff] }
 0x3bb   : > { %1231 = vrot.lane.b32.xlu0 %v2486_v3, %s2362_s25  ;;  %v953_v3 = vpop.permute.xlu1 %952 }
 0x3bf   : > { %v951_v5 = vpop.permute.xlu1 %950 }
 0x3c3   : > { %v949_v9 = vpop.permute.xlu1 %948 }
 0x3c7   : > { %v1236_v11 = vpop.permute.xlu1 %1235 }
 0x3cb   : > { %v1234_v12 = vpop.permute.xlu1 %1233 }
 0x41e   : > { %v690_v55 = vpop.xlane.xlu0 %689 }
 0x41f   : > { %2244 = vrcp.f32 %v690_v55 }
 0x422   : > { %v687_v56 = vpop.xlane.xlu0 %686 }
 0x423   : > { %2246 = vrcp.f32 %v687_v56 }
 0x426   : > { %v700_v57 = vpop.permute.xlu0 %699 }
 0x427   : > { %2051 = vmatprep.subr.mxu0 %v700_v57 }
 0x428   : > { %2052 = vmatpush3.msra.mxu0 %v700_v57 }
 0x429   : > { %2053 = vmatprep.subr.mxu0 %v698_v58 }
 0x42a   : > { %2054 = vmatpush3.msra.mxu0 %v698_v58  ;;  %v947_v7 = vpop.permute.xlu0 %946  ;;  %v379_v58 = vld [vmem:[%s2811_s2 + $0x48] sm:$0xff] }
 0x42b   : > { %2058 = vmatprep.subr.mxu0 %v377_v59 }
 0x42c   : > { %v2245_v60 = vpop.eup %2244 }
 0x42d   : > { %v694_v63 = vmul.f32 %v2245_v60, %v2241_v51  ;;  %v378_v60 = vld [vmem:[%s2811_s2 + $0x40] sm:$0xff] }
 0x42e   : > { %v1238_v8 = vpop.permute.xlu0 %1237 }
 0x430   : > { %v2247_v61 = vpop.eup %2246 }
 0x431   : > { %v693_v62 = vmul.f32 %v2247_v61, %v2243_v53 }
 0x432   : > { %v1232_v10 = vpop.permute.xlu0 %1231 }
 0x433   : > { %2055 = vmatprep.mubr.msk.f32.mxu0 %vm476_vm1, %v693_v62  ;;  %v2079_v62 = vpop.f32.mrf.mxu1 }
 0x434   : > { %2056 = vmatmul.mubr.msk.f32.vlgmr.msra.gmra.mxu0 %vm476_vm1, %v694_v63 }
 0x435   : > { %2059 = vmatpush3.msra.mxu0 %v377_v59  ;;  %v937_v63 = vpop.f32.mrf.mxu1 }
 0x436   : > { %2060 = vmatprep.subr.mxu0 %v376_v0 }
 0x437   : > { %2061 = vmatpush3.msra.mxu0 %v376_v0 }
 0x438   : > { %2062 = vmatprep.subr.mxu0 %v375_v1 }
 0x439   : > { %2063 = vmatpush3.msra.mxu0 %v375_v1 }
 0x43a   : > { %2064 = vmatprep.subr.mxu0 %v374_v2 }
 0x43b   : > { %2065 = vmatpush3.msra.mxu0 %v374_v2 }
 0x43c   : > { %2080 = vmatprep.subr.msk.mxu0 %vm386_vm0, %v953_v3 }
 0x4f4   : > { %v2057_v4 = vpop.f32.mrf.mxu0 }
 0x4f6   : > { %v775_v6 = vpop.f32.mrf.mxu0 }
 0x4f7   : > { %2066 = vmatprep.mubr.msk.f32.mxu0 %vm386_vm0, %v775_v6 }
 0x4f8   : > { %2067 = vmatmul.mubr.msk.f32.vlgmr.msra.gmra.mxu0 %vm386_vm0, %v2057_v4 }
 0x4f9   : > { %2081 = vmatpush3.xpose.msk.msra.mxu0 %vm386_vm0, %v953_v3  ;;  %2084 = vmatprep.mubr.msk.f32.mxu0 %vm386_vm0, %v947_v7  ;;  %v385_v7 = vld [vmem:[%s2811_s2 + $0x78] sm:$0xff] }
 0x4fa   : > { %2082 = vmatprep.subr.msk.mxu0 %vm386_vm0, %v951_v5 }
 0x4fd   : > { %2083 = vmatpush3.xpose.msk.msra.mxu0 %vm386_vm0, %v951_v5 }
 0x4fe   : > { %2105 = vmatprep.subr.msk.mxu0 %vm386_vm0, %v1238_v8 }
 0x500   : > { %2085 = vmatmul.mubr.msk.f32.vlgmr.msra.gmra.mxu0 %vm386_vm0, %v949_v9  ;;  %v383_v9 = vld [vmem:[%s2811_s2 + $0x68] sm:$0xff] }
 0x501   : > { %2106 = vmatpush3.xpose.msk.msra.mxu0 %vm386_vm0, %v1238_v8  ;;  %2109 = vmatprep.mubr.msk.f32.mxu0 %vm386_vm0, %v1232_v10  ;;  %v384_v8 = vld [vmem:[%s2811_s2 + $0x70] sm:$0xff]  ;;  %v382_v10 = vld [vmem:[%s2811_s2 + $0x60] sm:$0xff] }
 0x502   : > { %2107 = vmatprep.subr.msk.mxu0 %vm386_vm0, %v1236_v11 }
 0x505   : > { %2108 = vmatpush3.xpose.msk.msra.mxu0 %vm386_vm0, %v1236_v11 }
 0x506   : > { %2119 = vmatprep.subr.mxu0 %v385_v7 }
 0x508   : > { %2110 = vmatmul.mubr.msk.f32.vlgmr.msra.gmra.mxu0 %vm386_vm0, %v1234_v12 }
 0x509   : > { %2120 = vmatpush3.msra.mxu0 %v385_v7 }
 0x50a   : > { %2121 = vmatprep.subr.mxu0 %v384_v8 }
 0x50b   : > { %2122 = vmatpush3.msra.mxu0 %v384_v8 }
 0x50c   : > { %2123 = vmatprep.subr.mxu0 %v383_v9 }
 0x50d   : > { %2124 = vmatpush3.msra.mxu0 %v383_v9 }
 0x50e   : > { %2125 = vmatprep.subr.mxu0 %v382_v10 }
 0x50f   : > { %2126 = vmatpush3.msra.mxu0 %v382_v10 }
 0x5b8   : > { %v2599_v13 = vpop.f32.mrf.mxu0 }
 0x5b9   : > { %v943_v11 = vadd.f32 %v2079_v62, %v2599_v13  ;;  %v1526_v13 = vld [vmem:[#allocation2] sm:$0x1] }
 0x5ba   : > { %v2601_v14 = vpop.f32.mrf.mxu0 }
 0x5c0   : > { %v2086_v15 = vpop.f32.mrf.mxu0 }
 0x5c1   : > { %v1038_v16 = vmul.f32 0.17677669, %v2086_v15  ;;  %v938_v15 = vadd.f32 %v937_v63, %v2601_v14  ;;  %v2365_v14 = vmov 0  }
 0x5c2   : > { %v1028_v17 = vpop.f32.mrf.mxu0  ;;  %2230 = vset.pattern.permute.xlu1 %v2365_v14  ;;  %2231 = vset.pattern.permute.xlu0 %v2365_v14 }
 0x5c3   : > { %v1037_v18 = vmul.f32 0.17677669, %v1028_v17  ;;  %v1042_v19 = vsel %vm476_vm1, %v1038_v16, -inf }
 0x5c4   : > { %1043 = vmax.xlane.f32.xlu1 %v1042_v19 }
 0x5c5   : > { %v1039_v20 = vsel %vm476_vm1, %v1037_v18, -inf }
 0x5c6   : > { %1040 = vmax.xlane.f32.xlu0 %v1039_v20 }
 0x5c8   : > { %v2111_v23 = vpop.f32.mrf.mxu0 }
 0x5c9   : > { %v1323_v41 = vmul.f32 0.17677669, %v2111_v23  ;;  %v2363_v23 = vmov 0.0  }
 0x5ca   : > { %v1313_v24 = vpop.f32.mrf.mxu0  ;;  %2137 = vmatprep.subr.mxu0 %v2363_v23 }
 0x5cb   : > { %v1322_v25 = vmul.f32 0.17677669, %v1313_v24  ;;  %v1327_v43 = vsel %vm476_vm1, %v1323_v41, -inf }
 0x5cd   : > { %v1324_v26 = vsel %vm476_vm1, %v1322_v25, -inf }
 0x5d5   : > { %1061 = vrot.lane.b32.xlu1 %v2517_v22, %s2361_s24 }
 0x5f9   : > { %1325 = vmax.xlane.f32.xlu1 %v1324_v26 }
 0x64d   : > { %v1044_v27 = vpop.xlane.xlu1 %1043 }
 0x64e   : > { %v1046_v28 = vsub.f32 %v1038_v16, %v1044_v27 }
 0x64f   : > { %v1041_v29 = vpop.xlane.xlu0 %1040 }
 0x650   : > { %v1049_v30 = vmul.f32 1.442695, %v1046_v28  ;;  %v1045_v31 = vsub.f32 %v1037_v18, %v1041_v29 }
 0x651   : > { %v1062_v37 = vpop.permute.xlu1 %1061 }
 0x652   : > { %2248 = vpow2.f32 %v1049_v30  ;;  %v1047_v32 = vmul.f32 1.442695, %v1045_v31  ;;  %v1525_v31 = vld [vmem:[%s2813_s4] sm:$0x1] }
 0x654   : > { %2250 = vpow2.f32 %v1047_v32  ;;  %v1532_v32 = vlaneseq }
 0x65f   : > { %v2249_v33 = vpop.eup %2248 }
 0x660   : > { %v1054_v34 = vsel %vm476_vm1, %v2249_v33, 0.0 }
 0x661   : > { %v2251_v35 = vpop.eup %2250  ;;  %1055 = vadd.xlane.f32.xlu0 %v1054_v34 }
 0x662   : > { %v1051_v36 = vsel %vm476_vm1, %v2251_v35, 0.0 }
 0x665   : > { %1052 = vadd.xlane.f32.xlu0 %v1051_v36 }
 0x67b   : > { %1063 = vrot.lane.b32.xlu0 %v2514_v21, %s2361_s24  ;;  %s2366_s24 = smov [#allocation5]  }
 0x67c   : > { %s2272_s26 = sshll.u32 %s2366_s24, 4  ;;  %s2273_s26 = int_to_ptr.vmem [resolvable:$false] %s2272_s26 }
 0x67d   : > { %s2274_s28 = scalar_lea.vmem %s2273_s26, 32 }
 0x682   : > { %v1326_v38 = vpop.xlane.xlu1 %1325 }
 0x683   : > { %v1330_v39 = vsub.f32 %v1322_v25, %v1326_v38  ;;  %v1944_v25 = vld [vmem:[%s2812_s3] ss:$0 sm:$0xff] }
 0x685   : > { %v1332_v40 = vmul.f32 1.442695, %v1330_v39 }
 0x687   : > { %2252 = vpow2.f32 %v1332_v40 }
 0x694   : > { %v2253_v42 = vpop.eup %2252 }
 0x695   : > { %v1336_v44 = vsel %vm476_vm1, %v2253_v42, 0.0 }
 0x69a   : > { %1328 = vmax.xlane.f32.xlu0 %v1327_v43 }
 0x69e   : > { %1337 = vadd.xlane.f32.xlu0 %v1336_v44 }
 0x6b4   : > { %1348 = vrot.lane.b32.xlu0 %v2514_v21, %s2362_s25  ;;  %v380_v21 = vld [vmem:[%s2811_s2 + $0x50] sm:$0xff] }
 0x6ea   : > { %v1056_v45 = vpop.xlane.xlu0 %1055 }
 0x6eb   : > { %2254 = vrcp.f32 %v1056_v45 }
 0x6ee   : > { %v1053_v46 = vpop.xlane.xlu0 %1052 }
 0x6ef   : > { %2256 = vrcp.f32 %v1053_v46 }
 0x6f2   : > { %v1064_v47 = vpop.permute.xlu0 %1063 }
 0x6f3   : > { %2087 = vmatprep.subr.mxu1 %v1064_v47 }
 0x6f4   : > { %2088 = vmatpush3.msra.mxu1 %v1064_v47 }
 0x6f5   : > { %2089 = vmatprep.subr.mxu1 %v1062_v37 }
 0x6f6   : > { %2090 = vmatpush3.msra.mxu1 %v1062_v37 }
 0x6f7   : > { %2094 = vmatprep.subr.mxu1 %v381_v48 }
 0x6f8   : > { %v2255_v49 = vpop.eup %2254 }
 0x6f9   : > { %v1060_v52 = vmul.f32 %v2255_v49, %v2249_v33  ;;  %v1533_v33 = vshrl.u32 %v1532_v32, 7  ;;  %v1705_v49 = vld [vmem:[%s2815_s6 + $0x70] sm:$0xff] }
 0x6fb   : > { %v1534_v34 = vsub.s32 0, %v1533_v33 }
 0x6fc   : > { %v2257_v50 = vpop.eup %2256 }
 0x6fd   : > { %v1059_v51 = vmul.f32 %v2257_v50, %v2251_v35  ;;  %v1704_v50 = vld [vmem:[%s2815_s6 + $0x68] sm:$0xff] }
 0x6ff   : > { %2091 = vmatprep.mubr.msk.f32.mxu1 %vm476_vm1, %v1059_v51  ;;  %v1703_v51 = vld [vmem:[%s2815_s6 + $0x60] sm:$0xff] }
 0x700   : > { %2092 = vmatmul.mubr.msk.f32.vlgmr.msra.gmra.mxu1 %vm476_vm1, %v1060_v52  ;;  %v1702_v52 = vld [vmem:[%s2815_s6 + $0x58] sm:$0xff] }
 0x701   : > { %2095 = vmatpush3.msra.mxu1 %v381_v48  ;;  %v1706_v48 = vld [vmem:[%s2815_s6 + $0x78] sm:$0xff] }
 0x702   : > { %2096 = vmatprep.subr.mxu1 %v380_v21 }
 0x703   : > { %2097 = vmatpush3.msra.mxu1 %v380_v21  ;;  %v1701_v21 = vld [vmem:[%s2815_s6 + $0x50] sm:$0xff] }
 0x704   : > { %2098 = vmatprep.subr.mxu1 %v379_v58 }
 0x705   : > { %2099 = vmatpush3.msra.mxu1 %v379_v58  ;;  %v1695_v58 = vld [vmem:[%s2815_s6 + $0x20] sm:$0xff] }
 0x706   : > { %2100 = vmatprep.subr.mxu1 %v378_v60 }
 0x707   : > { %2101 = vmatpush3.msra.mxu1 %v378_v60  ;;  %v1693_v60 = vld [vmem:[%s2815_s6 + $0x10] sm:$0xff] }
 0x723   : > { %v1329_v53 = vpop.xlane.xlu0 %1328 }
 0x724   : > { %v1331_v54 = vsub.f32 %v1323_v41, %v1329_v53  ;;  %v1700_v53 = vld [vmem:[%s2815_s6 + $0x48] sm:$0xff] }
 0x726   : > { %v1334_v55 = vmul.f32 1.442695, %v1331_v54  ;;  %v1699_v54 = vld [vmem:[%s2815_s6 + $0x40] sm:$0xff] }
 0x727   : > { %v1338_v59 = vpop.xlane.xlu0 %1337 }
 0x728   : > { %2258 = vpow2.f32 %v1334_v55  ;;  %v1698_v55 = vld [vmem:[%s2815_s6 + $0x38] sm:$0xff] }
 0x729   : > { %2260 = vrcp.f32 %v1338_v59  ;;  %v1694_v59 = vld [vmem:[%s2815_s6 + $0x18] sm:$0xff] }
 0x72b   : > { %v1349_v61 = vpop.permute.xlu0 %1348 }
 0x72c   : > { %2112 = vmatprep.subr.mxu1 %v1349_v61 }
 0x735   : > { %v2259_v56 = vpop.eup %2258 }
 0x736   : > { %v1339_v57 = vsel %vm476_vm1, %v2259_v56, 0.0  ;;  %v2261_v0 = vpop.eup %2260 }
 0x737   : > { %1340 = vadd.xlane.f32.xlu1 %v1339_v57  ;;  %v1344_v4 = vmul.f32 %v2261_v0, %v2253_v42  ;;  %v1696_v57 = vld [vmem:[%s2815_s6 + $0x28] sm:$0xff] }
 0x748   : > { %1346 = vrot.lane.b32.xlu1 %v2517_v22, %s2362_s25  ;;  %s1950_s25 = sshll.u32 %s2471_s22, 4  ;;  %s2737_s22 = sand.u32 1, %s2350_s12  }
 0x749   : > { %s361_s17 = scalar_lea.vmem %s2810_s1, %s1950_s25  ;;  %s351_s27 = scalar_lea.vmem [#allocation5], %s2737_s22 }
 0x74a   : > { %v369_v46 = vld [vmem:[%s361_s17 + $0x8] sm:$0xff]  ;;  %v368_v47 = vld [vmem:[%s361_s17] sm:$0xff]  ;;  %s1810_s17 = sshll.u32 %s351_s27, 4  ;;  %s1785_s18 = scalar_lea.sflag [#allocation6], %s2737_s22  ;;  %s1811_s17 = int_to_ptr.vmem [resolvable:$true] %s1810_s17 }
 0x74b   : > { %s2268_s23 = scalar_lea.vmem %s1811_s17, 16  ;;  %p2275_p0 = scmp.lt.s32.totalorder %s1811_s17, %s2273_s26 }
 0x74c   : > { %1529 = vperm.xlu1 %2230, %v1526_v13   ;;  %p2269_p11 = scmp.ne.s32.totalorder %s1811_s17, %s2268_s23  ;;  %p2276_p1 = scmp.lt.s32.totalorder %s2274_s28, %s2268_s23 }
 0x74e   : > { %p2270_p12 = pnand %p2269_p11, %p2459_p5  ;;  %p2277_p2 = por %p2276_p1, %p2275_p0 }
 0x750   : > { %p2271_p13 = pneg %p2270_p12 }
 0x752   : > { %p2278_p3 = pnand %p2277_p2, %p2271_p13 }
 0x7c0   : > { %v2093_v1 = vpop.f32.mrf.mxu1  ;;  %v1341_v2 = vpop.xlane.xlu1 %1340 }
 0x7c1   : > { %2262 = vrcp.f32 %v1341_v2 }
 0x7c2   : > { %v1139_v3 = vpop.f32.mrf.mxu1 }
 0x7c3   : > { %2102 = vmatprep.mubr.msk.f32.mxu1 %vm386_vm0, %v1139_v3 }
 0x7c4   : > { %2103 = vmatmul.mubr.msk.f32.vlgmr.msra.gmra.mxu1 %vm386_vm0, %v2093_v1  ;;  %v1347_v5 = vpop.permute.xlu1 %1346  ;;  %v1691_v1 = vld [vmem:[%s2815_s6] sm:$0xff] }
 0x7c5   : > { %2116 = vmatprep.mubr.msk.f32.mxu1 %vm476_vm1, %v1344_v4  ;;  %2113 = vmatpush3.msra.mxu1 %v1349_v61  ;;  %v1692_v61 = vld [vmem:[%s2815_s6 + $0x8] sm:$0xff] }
 0x7c6   : > { %2114 = vmatprep.subr.mxu1 %v1347_v5 }
 0x7c7   : > { %2115 = vmatpush3.msra.mxu1 %v1347_v5 }
 0x7c8   : > { %2130 = vmatprep.subr.mxu1 %v2363_v23  ;;  %v1530_v35 = vpop.permute.xlu1 %1529 }
 0x7c9   : > { %v1535_v36 = vrot.slane %v1530_v35, %v1534_v34 }
 0x7ce   : > { %v2263_v22 = vpop.eup %2262 }
 0x7cf   : > { %v1345_v6 = vmul.f32 %v2263_v22, %v2259_v56  ;;  %v1697_v56 = vld [vmem:[%s2815_s6 + $0x30] sm:$0xff] }
 0x7d1   : > { %2117 = vmatmul.mubr.msk.f32.vlgmr.msra.gmra.mxu1 %vm476_vm1, %v1345_v6 }
 0x7d2   : > { %2134 = vmatprep.mubr.msk.f32.mxu1 %vm2364_vm2, %v2363_v23 }
 0x884   : > { %v2104_v12 = vpop.f32.mrf.mxu1 }
 0x885   : > { %v1230_v16 = vadd.f32 %v2104_v12, %v943_v11 }
 0x886   : > { %v1220_v17 = vpop.f32.mrf.mxu1 }
 0x887   : > { %v1229_v18 = vadd.f32 %v1220_v17, %v938_v15 }
 0x891   : > { %v2118_v19 = vpop.f32.mrf.mxu1 }
 0x893   : > { %v1424_v20 = vpop.f32.mrf.mxu1 }
 0x894   : > { %2127 = vmatprep.mubr.msk.f32.mxu0 %vm386_vm0, %v1424_v20 }
 0x895   : > { %2128 = vmatmul.mubr.msk.f32.vlgmr.msra.gmra.mxu0 %vm386_vm0, %v2118_v19 }
 0x896   : > { %2141 = vmatprep.mubr.msk.f32.mxu0 %vm2364_vm2, %v2363_v23  ;;  %2138 = vmatpush3.msra.mxu0 %v369_v46 }
 0x897   : > { %2139 = vmatprep.subr.mxu0 %v2363_v23 }
 0x898   : > { %2140 = vmatpush3.msra.mxu0 %v368_v47 }
 0x955   : > { %v2129_v24 = vpop.f32.mrf.mxu0 }
 0x956   : > { %v1515_v26 = vadd.f32 %v2129_v24, %v1230_v16 }
 0x957   : > { %v1505_v27 = vpop.f32.mrf.mxu0 }
 0x958   : > { %v1524_v28 = vadd.f32 %v1944_v25, %v1515_v26  ;;  %v1514_v29 = vadd.f32 %v1505_v27, %v1229_v18 }
 0x95a   : > { %2131 = vmatpush3.xpose.msra.mxu1 %v1524_v28  ;;  %v1523_v30 = vadd.f32 %v1944_v25, %v1514_v29 }
 0x95b   : > { %2132 = vmatprep.subr.mxu1 %v2363_v23 }
 0x95e   : > { %2133 = vmatpush3.xpose.msra.mxu1 %v1523_v30 }
 0x95f   : > { %2144 = vmatprep.subr.mxu1 %v2363_v23 }
 0x961   : > { %2135 = vmatmul.mubr.f32.vlgmr.msra.gmra.mxu1 %v1525_v31 }
 0x962   : > { %2176 = vmatprep.mubr.msk.f32.mxu1 %vm2364_vm2, %v2363_v23  ;;  %2145 = vmatpush3.msra.mxu1 %v1706_v48 }
 0x963   : > { %2146 = vmatprep.subr.mxu1 %v2363_v23 }
 0x964   : > { %2147 = vmatpush3.msra.mxu1 %v1705_v49 }
 0x965   : > { %2148 = vmatprep.subr.mxu1 %v2363_v23 }
 0x966   : > { %2149 = vmatpush3.msra.mxu1 %v1704_v50 }
 0x967   : > { %2150 = vmatprep.subr.mxu1 %v2363_v23 }
 0x968   : > { %2151 = vmatpush3.msra.mxu1 %v1703_v51 }
 0x969   : > { %2152 = vmatprep.subr.mxu1 %v2363_v23 }
 0x96a   : > { %2153 = vmatpush3.msra.mxu1 %v1702_v52 }
 0x96b   : > { %2154 = vmatprep.subr.mxu1 %v2363_v23 }
 0x96c   : > { %2155 = vmatpush3.msra.mxu1 %v1701_v21 }
 0x96d   : > { %2156 = vmatprep.subr.mxu1 %v2363_v23 }
 0x96e   : > { %2157 = vmatpush3.msra.mxu1 %v1700_v53 }
 0x96f   : > { %2158 = vmatprep.subr.mxu1 %v2363_v23 }
 0x970   : > { %2159 = vmatpush3.msra.mxu1 %v1699_v54 }
 0x971   : > { %2160 = vmatprep.subr.mxu1 %v2363_v23 }
 0x972   : > { %2161 = vmatpush3.msra.mxu1 %v1698_v55 }
 0x973   : > { %2162 = vmatprep.subr.mxu1 %v2363_v23 }
 0x974   : > { %2163 = vmatpush3.msra.mxu1 %v1697_v56 }
 0x975   : > { %2164 = vmatprep.subr.mxu1 %v2363_v23 }
 0x976   : > { %2165 = vmatpush3.msra.mxu1 %v1696_v57 }
 0x977   : > { %2166 = vmatprep.subr.mxu1 %v2363_v23 }
 0x978   : > { %2167 = vmatpush3.msra.mxu1 %v1695_v58 }
 0x979   : > { %2168 = vmatprep.subr.mxu1 %v2363_v23 }
 0x97a   : > { %2169 = vmatpush3.msra.mxu1 %v1694_v59 }
 0x97b   : > { %2170 = vmatprep.subr.mxu1 %v2363_v23 }
 0x97c   : > { %2171 = vmatpush3.msra.mxu1 %v1693_v60 }
 0x97d   : > { %2172 = vmatprep.subr.mxu1 %v2363_v23 }
 0x97e   : > { %2173 = vmatpush3.msra.mxu1 %v1692_v61 }
 0x97f   : > { %2174 = vmatprep.subr.mxu1 %v2363_v23 }
 0x980   : > { %2175 = vmatpush3.msra.mxu1 %v1691_v1 }
 0xa21   : > { %v1602_v37 = vpop.f32.mrf.mxu1 }
 0xa22   : > { %v1603_v38 = vadd.f32 %v1602_v37, %v1535_v36 }
 0xa23   : > { %v2136_v39 = vpop.f32.mrf.mxu1 }
 0xa24   : > { %v1607_v40 = vsel %vm1606_vm3, %v1603_v38, -inf }
 0xa25   : > { %1608 = vmax.xlane.f32.xlu1 %v1607_v40 }
 0xaae   : > { %v1609_v41 = vpop.xlane.xlu1 %1608 }
 0xaaf   : > { %v1610_v42 = vsub.f32 %v1603_v38, %v1609_v41 }
 0xab1   : > { %v1611_v43 = vmul.f32 1.442695, %v1610_v42 }
 0xab3   : > { %2264 = vpow2.f32 %v1611_v43 }
 0xac0   : > { %v2265_v44 = vpop.eup %2264 }
 0xac1   : > { %v1613_v45 = vsel %vm1606_vm3, %v2265_v44, 0.0 }
 0xac2   : > { %1614 = vadd.xlane.f32.xlu0 %v1613_v45 }
 0xb4b   : > { %v1615_v62 = vpop.xlane.xlu0 %1614 }
 0xb4c   : > { %2266 = vrcp.f32 %v1615_v62 }
 0xb59   : > { %v2267_v63 = vpop.eup %2266 }
 0xb5a   : > { %v1617_v0 = vmul.f32 %v2267_v63, %v2265_v44 }
 0xb5c   : > { %2142 = vmatmul.mubr.msk.f32.vlgmr.msra.gmra.mxu0 %vm476_vm1, %v1617_v0  ;;  %1779 = vst.msk [vmem:[%s351_s27] sm:$0x1] %vm1606_vm3, %v1617_v0 }
 0xc1c   : > { %v1687_v2 = vpop.f32.mrf.mxu0 }
 0xc1d   : > { %2177 = vmatmul.mubr.f32.vlgmr.msra.gmra.mxu1 %v1687_v2 }
 0xc1e   : > { %v2143_v3 = vpop.f32.mrf.mxu0 }
 0xc1f   : > { %2281 = shalt.err (!%p2278_p3)
}
 0xc20   : > { %s2282_s29 = scalar_lea.hbm %s1808_s15, 16  ;;  %s2286_s10 = scalar_lea.hbm %s2818_s9, 32 }
 0xc21   : > { %p2283_p4 = scmp.ne.s32.totalorder %s1808_s15, %s2282_s29  ;;  %p2287_p9 = scmp.lt.s32.totalorder %s1808_s15, %s2818_s9 }
 0xc22   : > { %p2288_p10 = scmp.lt.s32.totalorder %s2286_s10, %s2282_s29 }
 0xc23   : > { %p2284_p7 = pnand %p2283_p4, %p2459_p5 }
 0xc24   : > { %p2289_p11 = por %p2288_p10, %p2287_p9 }
 0xc25   : > { %p2285_p8 = pneg %p2284_p7 }
 0xc27   : > { %p2290_p12 = pnand %p2289_p11, %p2285_p8 }
 0xc29   : > { %2293 = shalt.err (!%p2290_p12)
}
 0xc2a   : > { %2181 = dma.vmem_to_hbm [thread:$0]  (%p2459_p5), %s1811_s17, 16, %s1808_s15, %s1785_s18   ;;  %v1707_v4 = vld [vmem:[%s2816_s7] sm:$0x1] }
 0xc2b   : > { %s345_s26 = scalar_lea.vmem [#allocation3], %s2737_s22  ;;  %s2824_s0 = sshll.u32 %s2442_s5, 4 }
 0xc2c   : > { %s1797_s28 = sshll.u32 %s345_s26, 4  ;;  %s2773_s27 = scalar_lea.hbm %s2817_s8, %s2824_s0  ;;  %s1798_s28 = int_to_ptr.vmem [resolvable:$true] %s1797_s28 }
 0xc2d   : > { %s1781_s25 = scalar_lea.sflag [#allocation4], %s2737_s22  ;;  %s2294_s10 = scalar_lea.vmem %s1798_s28, 16 }
 0xc2e   : > { %p2295_p13 = scmp.ne.s32.totalorder %s1798_s28, %s2294_s10  ;;  %s2367_s15 = smov [#allocation3]  }
 0xc2f   : > { %s2298_s17 = sshll.u32 %s2367_s15, 4  ;;  %s2299_s17 = int_to_ptr.vmem [resolvable:$false] %s2298_s17 }
 0xc30   : > { %p2296_p0 = pnand %p2295_p13, %p2459_p5  ;;  %s2300_s18 = scalar_lea.vmem %s2299_s17, 32 }
 0xc31   : > { %p2301_p2 = scmp.lt.s32.totalorder %s1798_s28, %s2299_s17  ;;  %p2302_p3 = scmp.lt.s32.totalorder %s2300_s18, %s2294_s10 }
 0xc32   : > { %p2297_p1 = pneg %p2296_p0 }
 0xc33   : > { %p2303_p4 = por %p2302_p3, %p2301_p2 }
 0xc35   : > { %p2304_p7 = pnand %p2303_p4, %p2297_p1 }
 0xcdd   : > { %v1774_v5 = vpop.f32.mrf.mxu1 }
 0xcde   : > { %v1775_v22 = vadd.f32 %v1774_v5, %v1707_v4 }
 0xcdf   : > { %v2178_v6 = vpop.f32.mrf.mxu1 }
 0xce0   : > { %1778 = vst [vmem:[%s345_s26] sm:$0x1] %v1775_v22 }
 0xce1   : > { %2307 = shalt.err (!%p2304_p7)
}
 0xce2   : > { %s2308_s5 = scalar_lea.hbm %s2773_s27, 16  ;;  %s2312_s24 = scalar_lea.hbm %s2817_s8, 32 }
 0xce3   : > { %p2309_p8 = scmp.ne.s32.totalorder %s2773_s27, %s2308_s5  ;;  %p2313_p11 = scmp.lt.s32.totalorder %s2773_s27, %s2817_s8 }
 0xce4   : > { %p2314_p12 = scmp.lt.s32.totalorder %s2312_s24, %s2308_s5 }
 0xce5   : > { %p2310_p9 = pnand %p2309_p8, %p2459_p5 }
 0xce6   : > { %p2315_p13 = por %p2314_p12, %p2313_p11 }
 0xce7   : > { %p2311_p10 = pneg %p2310_p9 }
 0xce9   : > { %p2316_p0 = pnand %p2315_p13, %p2311_p10 }
 0xceb   : > { %2319 = shalt.err (!%p2316_p0)
}
 0xcec   : > { %2180 = dma.vmem_to_hbm [thread:$0]  (%p2459_p5), %s1798_s28, 16, %s2773_s27, %s1781_s25  }
 0xced PF: > { %p2191_p1 = scmp.ge.s32.totalorder %s2358_s14, 2  ;;  %s1822_s30 = sand.u32 1, %s2346_s11  }
 0xcee   : > { %s1823_s29 = scalar_lea.sflag [#allocation4], %s1822_s30 }
 0xcef   : > { %p2185_p2 = pnand %p2191_p1, %p2463_p6 }
 0xcf1   : > { %p2186_p3 = pneg %p2185_p2 }
 0xcf3   : > { %2337 = dma.done.wait (%p2186_p3), %s1823_s29, 16  }
 0xcf4   : > { %2339 = vsyncadd (%p2186_p3), %s1823_s29, 4294967280  ;;  %s1831_s10 = scalar_lea.sflag [#allocation6], %s1822_s30 }
 0xcf5   : > { %2341 = dma.done.wait (%p2186_p3), %s1831_s10, 16  }
 0xcf6   : > { %2343 = vsyncadd (%p2186_p3), %s1831_s10, 4294967280  ;;  %p25_p5 = scmp.ge.s32.totalorder %s2446_s16, 4   ;;  %s2825_s11 = smov %s2350_s12 }
 0xcf7   : > { %s2826_s12 = smov %s2354_s13  ;;  %s2827_s13 = smov %s2457_s19 }
 0xcf8   : > { %s2828_s14 = smov %s2446_s16  ;;  %27 = sbr.rel (!%p25_p5) target bundleno = 8 (0x8), region = 107 }
 0xcfd   :  { %1835 = vsyncpa [#allocation4], 1 }
 0xcfe   :  { %1837 = vsyncpa [#allocation4 + $0x1], 1 }
 0xcff   :  { %1838 = vsyncpa [#allocation6], 1 }
 0xd00   :  { %1840 = vsyncpa [#allocation6 + $0x1], 1 }

</bundles_post_ra>
